<compile_context>
chip_gen: v6e
topology: v6e:2x2x1
jax: 0.10.0
libtpu: 0.0.40
codegen_flags: <defaults>
</compile_context>

<pallas_src>
import functools

import jax
import jax.numpy as jnp
import numpy as np
from jax import lax
from jax.experimental import pallas as pl
from jax.experimental.pallas import tpu as pltpu


# ----------------------------------------------------------------------------
# Fused kernel: all LSTM layers, whole sequence, one grid step (wavefront).
# Gate column layout inside the kernel is [i, f, o, g] (repacked at prepare).
# ----------------------------------------------------------------------------
def _elstm_wavefront_kernel(num_layers, hidden_size, seq, batch, *refs):
    L, H, B = num_layers, hidden_size, batch
    x_ref, wih0_ref, whh0_ref, bias0_ref = refs[:4]
    upper_refs = refs[4:4 + 2 * (L - 1)]
    hc_ref = refs[4 + 2 * (L - 1)]

    # Layer-0 non-recurrent projection hoisted over all timesteps: one batched
    # MXU matmul (bf16 operands, f32 accumulation), off the serial chain.
    x_bf = x_ref[...].astype(jnp.bfloat16)                       # (seq*B, d_in0)
    xg0 = jnp.dot(x_bf, wih0_ref[...],
                  preferred_element_type=jnp.float32) + bias0_ref[...]

    whh0 = whh0_ref[...]                                         # (H, 4H) bf16
    wstacks = [upper_refs[2 * i][...] for i in range(L - 1)]     # (2H, 4H) bf16
    ubias = [upper_refs[2 * i + 1][...] for i in range(L - 1)]   # (1, 4H) f32

    h = [jnp.zeros((B, H), jnp.float32) for _ in range(L)]
    c = [jnp.zeros((B, H), jnp.float32) for _ in range(L)]

    def cell(gates, c_prev):
        # Full-vreg EUP over the whole [i|f|o|g] vector (no masked 96-lane op);
        # per-gate extraction is 3 static lane realignments per step.
        s = jax.nn.sigmoid(gates)
        th = jnp.tanh(gates)
        i_g = s[:, 0 * H:1 * H]
        f_g = s[:, 1 * H:2 * H]
        o_g = s[:, 2 * H:3 * H]
        g_g = th[:, 3 * H:4 * H]
        c_new = f_g * c_prev + i_g * g_g
        h_new = o_g * jnp.tanh(c_new)
        return h_new, c_new

    # Wavefront: step k runs layer l's timestep t = k - l.  Layers are emitted
    # top-down so layer l reads layer l-1's h for timestep t (produced on the
    # previous wavefront step) before layer l-1 overwrites it.  Fully unrolled
    # straight-line code: the scheduler interleaves the L serial chains.
    for k in range(seq + L - 1):
        for l in reversed(range(L)):
            t = k - l
            if t < 0 or t >= seq:
                continue
            if l == 0:
                gates = xg0[t * B:(t + 1) * B, :] + jnp.dot(
                    h[0].astype(jnp.bfloat16), whh0,
                    preferred_element_type=jnp.float32)
            else:
                # Fused input+recurrent matmul: one MXU push per step for the
                # upper layer: [h_below_t , h_self_{t-1}] @ [W_ih^T ; W_hh^T].
                inp = jnp.concatenate([h[l - 1], h[l]],
                                      axis=1).astype(jnp.bfloat16)
                gates = jnp.dot(inp, wstacks[l - 1],
                                preferred_element_type=jnp.float32) + ubias[l - 1]
            h[l], c[l] = cell(gates, c[l])

    # Final states written exactly once per layer, packed [h | c] along lanes.
    for l in range(L):
        hc_ref[l] = jnp.concatenate([h[l], c[l]], axis=1).astype(hc_ref.dtype)


def _reorder_ifgo_to_ifog(w, H):
    """Permute the 4H gate axis from PyTorch's [i,f,g,o] to [i,f,o,g]."""
    return jnp.concatenate(
        [w[..., 0:2 * H], w[..., 3 * H:4 * H], w[..., 2 * H:3 * H]], axis=-1)


def prepare_elstm_params(params):
    """ONE-TIME repack of PyTorch-layout params into kernel layout.

    Input: per layer (W_ih^T (d_in,4H), W_hh^T (H,4H), fused bias (1,4H)) in
    PyTorch [i,f,g,o] order.  Output layout (all gate columns -> [i,f,o,g]):
      layer 0     : (W_ih^T bf16, W_hh^T bf16, bias f32)
      layer l >= 1: ([W_ih^T ; W_hh^T] stacked (2H,4H) bf16, bias f32)
    """
    H = params[0][1].shape[0]
    prepared = []
    for l, (wih_t, whh_t, bias) in enumerate(params):
        wih_r = _reorder_ifgo_to_ifog(wih_t, H)
        whh_r = _reorder_ifgo_to_ifog(whh_t, H)
        bias_r = _reorder_ifgo_to_ifog(bias, H).astype(jnp.float32)
        if l == 0:
            prepared.append((wih_r.astype(jnp.bfloat16),
                             whh_r.astype(jnp.bfloat16), bias_r))
        else:
            wstack = jnp.concatenate([wih_r, whh_r], axis=0).astype(jnp.bfloat16)
            prepared.append((wstack, bias_r))
    return tuple(prepared)


# ----------------------------------------------------------------------------
# eLSTM wrapper: one pallas_call for the whole stacked LSTM.
# ----------------------------------------------------------------------------
def elstm_forward(frame_features, prepared):
    """frame_features: (seq_len, batch, input_size); prepared: see
    prepare_elstm_params.  Returns (h_last, c_last), each
    (num_layers, batch, hidden_size)."""
    seq, B, d_in0 = frame_features.shape
    L = len(prepared)
    H = prepared[0][1].shape[0]          # layer-0 W_hh^T is (H, 4H)
    dtype = frame_features.dtype

    # Wrapper-side reshape: kernel sees a lane/sublane-dense (seq*B, d_in) tile.
    x2d = frame_features.reshape(seq * B, d_in0)

    flat = [x2d]
    in_specs = [pl.BlockSpec((seq * B, d_in0), lambda i: (0, 0))]
    wih0, whh0, bias0 = prepared[0]
    flat += [wih0, whh0, bias0]
    in_specs += [
        pl.BlockSpec((d_in0, 4 * H), lambda i: (0, 0)),   # W_ih^T  (resident)
        pl.BlockSpec((H, 4 * H), lambda i: (0, 0)),       # W_hh^T  (resident)
        pl.BlockSpec((1, 4 * H), lambda i: (0, 0)),       # fused bias
    ]
    for l in range(1, L):
        wstack, bias = prepared[l]
        flat += [wstack, bias]
        in_specs += [
            pl.BlockSpec((2 * H, 4 * H), lambda i: (0, 0)),  # [W_ih^T;W_hh^T]
            pl.BlockSpec((1, 4 * H), lambda i: (0, 0)),
        ]

    # Advisory cost estimate for XLA's scheduler.
    flops = (2 * seq * B * d_in0 * 4 * H        # layer-0 input projection
             + 2 * seq * B * H * 4 * H          # layer-0 recurrent matmul
             + 10 * seq * B * H)
    for _ in range(1, L):
        flops += 2 * seq * B * (2 * H) * 4 * H + 10 * seq * B * H
    transcendentals = L * seq * B * (2 * 4 * H + H)
    bytes_accessed = 4 * frame_features.size + 4 * L * B * 2 * H
    for arr in flat[1:]:
        bytes_accessed += arr.size * arr.dtype.itemsize

    kernel = functools.partial(_elstm_wavefront_kernel, L, H, seq, B)

    hc = pl.pallas_call(
        kernel,
        out_shape=jax.ShapeDtypeStruct((L, B, 2 * H), dtype),
        grid_spec=pltpu.PrefetchScalarGridSpec(
            num_scalar_prefetch=0,
            grid=(1,),                           # single step: all VMEM-resident
            in_specs=in_specs,
            out_specs=pl.BlockSpec((L, B, 2 * H), lambda i: (0, 0, 0)),
        ),
        compiler_params=pltpu.CompilerParams(
            dimension_semantics=("arbitrary",),
        ),
        cost_estimate=pl.CostEstimate(
            flops=flops,
            transcendentals=transcendentals,
            bytes_accessed=bytes_accessed,
        ),
    )(*flat)

    h_last = hc[:, :, :H]
    c_last = hc[:, :, H:]
    return h_last, c_last


def init_elstm_params(key, input_size, hidden_size, num_layers=2,
                      dtype=jnp.float32):
    """Synthetic init matching PyTorch nn.LSTM parameter shapes / gate order.

    Per layer l: W_ih (4H, d_in_l), W_hh (4H, H), b_ih (4H,), b_hh (4H,).
    Stored transposed with fused bias, PyTorch [i,f,g,o] gate order.
    """
    params = []
    H = hidden_size
    bound = 1.0 / np.sqrt(H)
    for layer in range(num_layers):
        d_in = input_size if layer == 0 else hidden_size
        key, k1, k2, k3, k4 = jax.random.split(key, 5)
        w_ih = jax.random.uniform(k1, (4 * H, d_in), dtype, -bound, bound)
        w_hh = jax.random.uniform(k2, (4 * H, H), dtype, -bound, bound)
        b_ih = jax.random.uniform(k3, (4 * H,), dtype, -bound, bound)
        b_hh = jax.random.uniform(k4, (4 * H,), dtype, -bound, bound)
        params.append((w_ih.T, w_hh.T, (b_ih + b_hh).reshape(1, 4 * H)))
    return params


# ----------------------------------------------------------------------------
# Pure-JAX reference (lax.scan, PyTorch [i,f,g,o] gate order, f32 throughout).
# ----------------------------------------------------------------------------
def elstm_reference(frame_features, params):
    layer_in = frame_features
    h_lasts, c_lasts = [], []
    for (wih_t, whh_t, bias) in params:
        H = whh_t.shape[0]
        B = frame_features.shape[1]
        h0 = jnp.zeros((B, H), jnp.float32)
        c0 = jnp.zeros((B, H), jnp.float32)

        def step(carry, x_t):
            h, c = carry
            gates = x_t @ wih_t + h @ whh_t + bias
            i = jax.nn.sigmoid(gates[:, 0 * H:1 * H])
            f = jax.nn.sigmoid(gates[:, 1 * H:2 * H])
            g = jnp.tanh(gates[:, 2 * H:3 * H])
            o = jax.nn.sigmoid(gates[:, 3 * H:4 * H])
            c_new = f * c + i * g
            h_new = o * jnp.tanh(c_new)
            return (h_new, c_new), h_new

        (h_last, c_last), h_seq = lax.scan(step, (h0, c0), layer_in)
        h_lasts.append(h_last)
        c_lasts.append(c_last)
        layer_in = h_seq
    return jnp.stack(h_lasts, 0), jnp.stack(c_lasts, 0)


if __name__ == "__main__":
    # Shapes implied by eLSTM.forward docstring: [seq_len, 1, hidden_size].
    seq_len, batch, input_size, hidden_size, num_layers = 8, 1, 32, 32, 2

    key = jax.random.PRNGKey(0)
    k_x, k_p = jax.random.split(key)
    frame_features = jax.random.normal(
        k_x, (seq_len, batch, input_size), jnp.float32)
    params = init_elstm_params(k_p, input_size, hidden_size, num_layers)

    # One-time weight repack/stack/bf16-cast, hoisted out of the forward call.
    prepared = prepare_elstm_params(params)

    # Benchmark note: measure the jitted forward via xprof (min of runs), not
    # eager dispatch / perf_counter — wrapper overhead dwarfs a ~us kernel.
    fwd = jax.jit(elstm_forward)
    h_last, c_last = fwd(frame_features, prepared)
    h_last = jax.block_until_ready(h_last)
    c_last = jax.block_until_ready(c_last)

    # Sanity check against pure-f32 JAX reference.  Kernel matmuls use bf16
    # operands with f32 accumulation -> looser tolerance than pure f32.
    h_ref, c_ref = elstm_reference(frame_features, params)
    assert h_last.shape == (num_layers, batch, hidden_size)
    assert c_last.shape == (num_layers, batch, hidden_size)
    np.testing.assert_allclose(np.asarray(h_last), np.asarray(h_ref),
                               rtol=2e-2, atol=2e-2)
    np.testing.assert_allclose(np.asarray(c_last), np.asarray(c_ref),
                               rtol=2e-2, atol=2e-2)

    print("KERNEL_OK")
</pallas_src>

<mosaic_0001>
module attributes {stable_mosaic.version = 11 : i64} {
  func.func @_elstm_wavefront_kernel(%arg0: i32, %arg1: memref<8x32xf32, #tpu.memory_space<vmem>>, %arg2: memref<32x128xbf16, #tpu.memory_space<vmem>>, %arg3: memref<32x128xbf16, #tpu.memory_space<vmem>>, %arg4: memref<1x128xf32, #tpu.memory_space<vmem>>, %arg5: memref<64x128xbf16, #tpu.memory_space<vmem>>, %arg6: memref<1x128xf32, #tpu.memory_space<vmem>>, %arg7: memref<2x1x64xf32, #tpu.memory_space<vmem>>) attributes {dimension_semantics = [#tpu.dimension_semantics<arbitrary>], iteration_bounds = array<i64: 1>, scalar_prefetch = 0 : i64, scratch_operands = 0 : i64, tpu.core_type = #tpu.core_type<tc>, window_params = [{pipeline_mode = #tpu.pipeline_mode<synchronous>, transform_indices = @transform_0, window_bounds = array<i64: 8, 32>}, {pipeline_mode = #tpu.pipeline_mode<synchronous>, transform_indices = @transform_1, window_bounds = array<i64: 32, 128>}, {pipeline_mode = #tpu.pipeline_mode<synchronous>, transform_indices = @transform_2, window_bounds = array<i64: 32, 128>}, {pipeline_mode = #tpu.pipeline_mode<synchronous>, transform_indices = @transform_3, window_bounds = array<i64: 1, 128>}, {pipeline_mode = #tpu.pipeline_mode<synchronous>, transform_indices = @transform_4, window_bounds = array<i64: 64, 128>}, {pipeline_mode = #tpu.pipeline_mode<synchronous>, transform_indices = @transform_5, window_bounds = array<i64: 1, 128>}, {pipeline_mode = #tpu.pipeline_mode<synchronous>, transform_indices = @transform_6, window_bounds = array<i64: 2, 1, 64>}]} {
    %c0 = arith.constant 0 : index
    %c0_0 = arith.constant 0 : index
    %0 = vector.load %arg1[%c0, %c0_0] : memref<8x32xf32, #tpu.memory_space<vmem>>, vector<8x32xf32>
    %1 = arith.truncf %0 : vector<8x32xf32> to vector<8x32xbf16>
    %c0_1 = arith.constant 0 : index
    %c0_2 = arith.constant 0 : index
    %2 = vector.load %arg2[%c0_1, %c0_2] : memref<32x128xbf16, #tpu.memory_space<vmem>>, vector<32x128xbf16>
    %cst = arith.constant dense<0.000000e+00> : vector<8x128xf32>
    %3 = tpu.matmul %1, %2, %cst {dimension_numbers = #tpu.dot_dimension_numbers<[1], [0], [0], [1], [0, 0, 1, 1], [], []>} : vector<8x32xbf16>, vector<32x128xbf16>, vector<8x128xf32> -> vector<8x128xf32>
    %c0_3 = arith.constant 0 : index
    %c0_4 = arith.constant 0 : index
    %4 = vector.load %arg4[%c0_3, %c0_4] : memref<1x128xf32, #tpu.memory_space<vmem>>, vector<1x128xf32>
    %5 = vector.broadcast %4 : vector<1x128xf32> to vector<8x128xf32>
    %6 = arith.addf %3, %5 : vector<8x128xf32>
    %c0_5 = arith.constant 0 : index
    %c0_6 = arith.constant 0 : index
    %7 = vector.load %arg3[%c0_5, %c0_6] : memref<32x128xbf16, #tpu.memory_space<vmem>>, vector<32x128xbf16>
    %c0_7 = arith.constant 0 : index
    %c0_8 = arith.constant 0 : index
    %8 = vector.load %arg5[%c0_7, %c0_8] : memref<64x128xbf16, #tpu.memory_space<vmem>>, vector<64x128xbf16>
    %c0_9 = arith.constant 0 : index
    %c0_10 = arith.constant 0 : index
    %9 = vector.load %arg6[%c0_9, %c0_10] : memref<1x128xf32, #tpu.memory_space<vmem>>, vector<1x128xf32>
    %cst_11 = arith.constant 0.000000e+00 : f32
    %10 = vector.broadcast %cst_11 : f32 to vector<1x32xf32>
    %cst_12 = arith.constant 0.000000e+00 : f32
    %11 = vector.broadcast %cst_12 : f32 to vector<1x32xf32>
    %cst_13 = arith.constant 0.000000e+00 : f32
    %12 = vector.broadcast %cst_13 : f32 to vector<1x32xf32>
    %cst_14 = arith.constant 0.000000e+00 : f32
    %13 = vector.broadcast %cst_14 : f32 to vector<1x32xf32>
    %14 = vector.extract_strided_slice %6 {offsets = [0, 0], sizes = [1, 128], strides = [1, 1]} : vector<8x128xf32> to vector<1x128xf32>
    %15 = arith.truncf %10 : vector<1x32xf32> to vector<1x32xbf16>
    %cst_15 = arith.constant dense<0.000000e+00> : vector<1x128xf32>
    %16 = tpu.matmul %15, %7, %cst_15 {dimension_numbers = #tpu.dot_dimension_numbers<[1], [0], [0], [1], [0, 0, 1, 1], [], []>} : vector<1x32xbf16>, vector<32x128xbf16>, vector<1x128xf32> -> vector<1x128xf32>
    %17 = arith.addf %14, %16 : vector<1x128xf32>
    %18 = arith.negf %17 : vector<1x128xf32>
    %19 = math.exp %18 : vector<1x128xf32>
    %cst_16 = arith.constant 1.000000e+00 : f32
    %20 = vector.broadcast %cst_16 : f32 to vector<1x128xf32>
    %21 = arith.addf %20, %19 : vector<1x128xf32>
    %22 = arith.divf %20, %21 : vector<1x128xf32>
    %23 = math.tanh %17 : vector<1x128xf32>
    %24 = vector.extract_strided_slice %22 {offsets = [0, 0], sizes = [1, 32], strides = [1, 1]} : vector<1x128xf32> to vector<1x32xf32>
    %25 = vector.extract_strided_slice %22 {offsets = [0, 32], sizes = [1, 32], strides = [1, 1]} : vector<1x128xf32> to vector<1x32xf32>
    %26 = vector.extract_strided_slice %22 {offsets = [0, 64], sizes = [1, 32], strides = [1, 1]} : vector<1x128xf32> to vector<1x32xf32>
    %27 = vector.extract_strided_slice %23 {offsets = [0, 96], sizes = [1, 32], strides = [1, 1]} : vector<1x128xf32> to vector<1x32xf32>
    %28 = arith.mulf %25, %12 : vector<1x32xf32>
    %29 = arith.mulf %24, %27 : vector<1x32xf32>
    %30 = arith.addf %28, %29 : vector<1x32xf32>
    %31 = math.tanh %30 : vector<1x32xf32>
    %32 = arith.mulf %26, %31 : vector<1x32xf32>
    %33 = tpu.concatenate %32, %11 in 1 : vector<1x32xf32>, vector<1x32xf32> -> vector<1x64xf32>
    %34 = arith.truncf %33 : vector<1x64xf32> to vector<1x64xbf16>
    %cst_17 = arith.constant dense<0.000000e+00> : vector<1x128xf32>
    %35 = tpu.matmul %34, %8, %cst_17 {dimension_numbers = #tpu.dot_dimension_numbers<[1], [0], [0], [1], [0, 0, 1, 1], [], []>} : vector<1x64xbf16>, vector<64x128xbf16>, vector<1x128xf32> -> vector<1x128xf32>
    %36 = arith.addf %35, %9 : vector<1x128xf32>
    %37 = arith.negf %36 : vector<1x128xf32>
    %38 = math.exp %37 : vector<1x128xf32>
    %cst_18 = arith.constant 1.000000e+00 : f32
    %39 = vector.broadcast %cst_18 : f32 to vector<1x128xf32>
    %40 = arith.addf %39, %38 : vector<1x128xf32>
    %41 = arith.divf %39, %40 : vector<1x128xf32>
    %42 = math.tanh %36 : vector<1x128xf32>
    %43 = vector.extract_strided_slice %41 {offsets = [0, 0], sizes = [1, 32], strides = [1, 1]} : vector<1x128xf32> to vector<1x32xf32>
    %44 = vector.extract_strided_slice %41 {offsets = [0, 32], sizes = [1, 32], strides = [1, 1]} : vector<1x128xf32> to vector<1x32xf32>
    %45 = vector.extract_strided_slice %41 {offsets = [0, 64], sizes = [1, 32], strides = [1, 1]} : vector<1x128xf32> to vector<1x32xf32>
    %46 = vector.extract_strided_slice %42 {offsets = [0, 96], sizes = [1, 32], strides = [1, 1]} : vector<1x128xf32> to vector<1x32xf32>
    %47 = arith.mulf %44, %13 : vector<1x32xf32>
    %48 = arith.mulf %43, %46 : vector<1x32xf32>
    %49 = arith.addf %47, %48 : vector<1x32xf32>
    %50 = math.tanh %49 : vector<1x32xf32>
    %51 = arith.mulf %45, %50 : vector<1x32xf32>
    %52 = vector.extract_strided_slice %6 {offsets = [1, 0], sizes = [1, 128], strides = [1, 1]} : vector<8x128xf32> to vector<1x128xf32>
    %53 = arith.truncf %32 : vector<1x32xf32> to vector<1x32xbf16>
    %cst_19 = arith.constant dense<0.000000e+00> : vector<1x128xf32>
    %54 = tpu.matmul %53, %7, %cst_19 {dimension_numbers = #tpu.dot_dimension_numbers<[1], [0], [0], [1], [0, 0, 1, 1], [], []>} : vector<1x32xbf16>, vector<32x128xbf16>, vector<1x128xf32> -> vector<1x128xf32>
    %55 = arith.addf %52, %54 : vector<1x128xf32>
    %56 = arith.negf %55 : vector<1x128xf32>
    %57 = math.exp %56 : vector<1x128xf32>
    %cst_20 = arith.constant 1.000000e+00 : f32
    %58 = vector.broadcast %cst_20 : f32 to vector<1x128xf32>
    %59 = arith.addf %58, %57 : vector<1x128xf32>
    %60 = arith.divf %58, %59 : vector<1x128xf32>
    %61 = math.tanh %55 : vector<1x128xf32>
    %62 = vector.extract_strided_slice %60 {offsets = [0, 0], sizes = [1, 32], strides = [1, 1]} : vector<1x128xf32> to vector<1x32xf32>
    %63 = vector.extract_strided_slice %60 {offsets = [0, 32], sizes = [1, 32], strides = [1, 1]} : vector<1x128xf32> to vector<1x32xf32>
    %64 = vector.extract_strided_slice %60 {offsets = [0, 64], sizes = [1, 32], strides = [1, 1]} : vector<1x128xf32> to vector<1x32xf32>
    %65 = vector.extract_strided_slice %61 {offsets = [0, 96], sizes = [1, 32], strides = [1, 1]} : vector<1x128xf32> to vector<1x32xf32>
    %66 = arith.mulf %63, %30 : vector<1x32xf32>
    %67 = arith.mulf %62, %65 : vector<1x32xf32>
    %68 = arith.addf %66, %67 : vector<1x32xf32>
    %69 = math.tanh %68 : vector<1x32xf32>
    %70 = arith.mulf %64, %69 : vector<1x32xf32>
    %71 = tpu.concatenate %70, %51 in 1 : vector<1x32xf32>, vector<1x32xf32> -> vector<1x64xf32>
    %72 = arith.truncf %71 : vector<1x64xf32> to vector<1x64xbf16>
    %cst_21 = arith.constant dense<0.000000e+00> : vector<1x128xf32>
    %73 = tpu.matmul %72, %8, %cst_21 {dimension_numbers = #tpu.dot_dimension_numbers<[1], [0], [0], [1], [0, 0, 1, 1], [], []>} : vector<1x64xbf16>, vector<64x128xbf16>, vector<1x128xf32> -> vector<1x128xf32>
    %74 = arith.addf %73, %9 : vector<1x128xf32>
    %75 = arith.negf %74 : vector<1x128xf32>
    %76 = math.exp %75 : vector<1x128xf32>
    %cst_22 = arith.constant 1.000000e+00 : f32
    %77 = vector.broadcast %cst_22 : f32 to vector<1x128xf32>
    %78 = arith.addf %77, %76 : vector<1x128xf32>
    %79 = arith.divf %77, %78 : vector<1x128xf32>
    %80 = math.tanh %74 : vector<1x128xf32>
    %81 = vector.extract_strided_slice %79 {offsets = [0, 0], sizes = [1, 32], strides = [1, 1]} : vector<1x128xf32> to vector<1x32xf32>
    %82 = vector.extract_strided_slice %79 {offsets = [0, 32], sizes = [1, 32], strides = [1, 1]} : vector<1x128xf32> to vector<1x32xf32>
    %83 = vector.extract_strided_slice %79 {offsets = [0, 64], sizes = [1, 32], strides = [1, 1]} : vector<1x128xf32> to vector<1x32xf32>
    %84 = vector.extract_strided_slice %80 {offsets = [0, 96], sizes = [1, 32], strides = [1, 1]} : vector<1x128xf32> to vector<1x32xf32>
    %85 = arith.mulf %82, %49 : vector<1x32xf32>
    %86 = arith.mulf %81, %84 : vector<1x32xf32>
    %87 = arith.addf %85, %86 : vector<1x32xf32>
    %88 = math.tanh %87 : vector<1x32xf32>
    %89 = arith.mulf %83, %88 : vector<1x32xf32>
    %90 = vector.extract_strided_slice %6 {offsets = [2, 0], sizes = [1, 128], strides = [1, 1]} : vector<8x128xf32> to vector<1x128xf32>
    %91 = arith.truncf %70 : vector<1x32xf32> to vector<1x32xbf16>
    %cst_23 = arith.constant dense<0.000000e+00> : vector<1x128xf32>
    %92 = tpu.matmul %91, %7, %cst_23 {dimension_numbers = #tpu.dot_dimension_numbers<[1], [0], [0], [1], [0, 0, 1, 1], [], []>} : vector<1x32xbf16>, vector<32x128xbf16>, vector<1x128xf32> -> vector<1x128xf32>
    %93 = arith.addf %90, %92 : vector<1x128xf32>
    %94 = arith.negf %93 : vector<1x128xf32>
    %95 = math.exp %94 : vector<1x128xf32>
    %cst_24 = arith.constant 1.000000e+00 : f32
    %96 = vector.broadcast %cst_24 : f32 to vector<1x128xf32>
    %97 = arith.addf %96, %95 : vector<1x128xf32>
    %98 = arith.divf %96, %97 : vector<1x128xf32>
    %99 = math.tanh %93 : vector<1x128xf32>
    %100 = vector.extract_strided_slice %98 {offsets = [0, 0], sizes = [1, 32], strides = [1, 1]} : vector<1x128xf32> to vector<1x32xf32>
    %101 = vector.extract_strided_slice %98 {offsets = [0, 32], sizes = [1, 32], strides = [1, 1]} : vector<1x128xf32> to vector<1x32xf32>
    %102 = vector.extract_strided_slice %98 {offsets = [0, 64], sizes = [1, 32], strides = [1, 1]} : vector<1x128xf32> to vector<1x32xf32>
    %103 = vector.extract_strided_slice %99 {offsets = [0, 96], sizes = [1, 32], strides = [1, 1]} : vector<1x128xf32> to vector<1x32xf32>
    %104 = arith.mulf %101, %68 : vector<1x32xf32>
    %105 = arith.mulf %100, %103 : vector<1x32xf32>
    %106 = arith.addf %104, %105 : vector<1x32xf32>
    %107 = math.tanh %106 : vector<1x32xf32>
    %108 = arith.mulf %102, %107 : vector<1x32xf32>
    %109 = tpu.concatenate %108, %89 in 1 : vector<1x32xf32>, vector<1x32xf32> -> vector<1x64xf32>
    %110 = arith.truncf %109 : vector<1x64xf32> to vector<1x64xbf16>
    %cst_25 = arith.constant dense<0.000000e+00> : vector<1x128xf32>
    %111 = tpu.matmul %110, %8, %cst_25 {dimension_numbers = #tpu.dot_dimension_numbers<[1], [0], [0], [1], [0, 0, 1, 1], [], []>} : vector<1x64xbf16>, vector<64x128xbf16>, vector<1x128xf32> -> vector<1x128xf32>
    %112 = arith.addf %111, %9 : vector<1x128xf32>
    %113 = arith.negf %112 : vector<1x128xf32>
    %114 = math.exp %113 : vector<1x128xf32>
    %cst_26 = arith.constant 1.000000e+00 : f32
    %115 = vector.broadcast %cst_26 : f32 to vector<1x128xf32>
    %116 = arith.addf %115, %114 : vector<1x128xf32>
    %117 = arith.divf %115, %116 : vector<1x128xf32>
    %118 = math.tanh %112 : vector<1x128xf32>
    %119 = vector.extract_strided_slice %117 {offsets = [0, 0], sizes = [1, 32], strides = [1, 1]} : vector<1x128xf32> to vector<1x32xf32>
    %120 = vector.extract_strided_slice %117 {offsets = [0, 32], sizes = [1, 32], strides = [1, 1]} : vector<1x128xf32> to vector<1x32xf32>
    %121 = vector.extract_strided_slice %117 {offsets = [0, 64], sizes = [1, 32], strides = [1, 1]} : vector<1x128xf32> to vector<1x32xf32>
    %122 = vector.extract_strided_slice %118 {offsets = [0, 96], sizes = [1, 32], strides = [1, 1]} : vector<1x128xf32> to vector<1x32xf32>
    %123 = arith.mulf %120, %87 : vector<1x32xf32>
    %124 = arith.mulf %119, %122 : vector<1x32xf32>
    %125 = arith.addf %123, %124 : vector<1x32xf32>
    %126 = math.tanh %125 : vector<1x32xf32>
    %127 = arith.mulf %121, %126 : vector<1x32xf32>
    %128 = vector.extract_strided_slice %6 {offsets = [3, 0], sizes = [1, 128], strides = [1, 1]} : vector<8x128xf32> to vector<1x128xf32>
    %129 = arith.truncf %108 : vector<1x32xf32> to vector<1x32xbf16>
    %cst_27 = arith.constant dense<0.000000e+00> : vector<1x128xf32>
    %130 = tpu.matmul %129, %7, %cst_27 {dimension_numbers = #tpu.dot_dimension_numbers<[1], [0], [0], [1], [0, 0, 1, 1], [], []>} : vector<1x32xbf16>, vector<32x128xbf16>, vector<1x128xf32> -> vector<1x128xf32>
    %131 = arith.addf %128, %130 : vector<1x128xf32>
    %132 = arith.negf %131 : vector<1x128xf32>
    %133 = math.exp %132 : vector<1x128xf32>
    %cst_28 = arith.constant 1.000000e+00 : f32
    %134 = vector.broadcast %cst_28 : f32 to vector<1x128xf32>
    %135 = arith.addf %134, %133 : vector<1x128xf32>
    %136 = arith.divf %134, %135 : vector<1x128xf32>
    %137 = math.tanh %131 : vector<1x128xf32>
    %138 = vector.extract_strided_slice %136 {offsets = [0, 0], sizes = [1, 32], strides = [1, 1]} : vector<1x128xf32> to vector<1x32xf32>
    %139 = vector.extract_strided_slice %136 {offsets = [0, 32], sizes = [1, 32], strides = [1, 1]} : vector<1x128xf32> to vector<1x32xf32>
    %140 = vector.extract_strided_slice %136 {offsets = [0, 64], sizes = [1, 32], strides = [1, 1]} : vector<1x128xf32> to vector<1x32xf32>
    %141 = vector.extract_strided_slice %137 {offsets = [0, 96], sizes = [1, 32], strides = [1, 1]} : vector<1x128xf32> to vector<1x32xf32>
    %142 = arith.mulf %139, %106 : vector<1x32xf32>
    %143 = arith.mulf %138, %141 : vector<1x32xf32>
    %144 = arith.addf %142, %143 : vector<1x32xf32>
    %145 = math.tanh %144 : vector<1x32xf32>
    %146 = arith.mulf %140, %145 : vector<1x32xf32>
    %147 = tpu.concatenate %146, %127 in 1 : vector<1x32xf32>, vector<1x32xf32> -> vector<1x64xf32>
    %148 = arith.truncf %147 : vector<1x64xf32> to vector<1x64xbf16>
    %cst_29 = arith.constant dense<0.000000e+00> : vector<1x128xf32>
    %149 = tpu.matmul %148, %8, %cst_29 {dimension_numbers = #tpu.dot_dimension_numbers<[1], [0], [0], [1], [0, 0, 1, 1], [], []>} : vector<1x64xbf16>, vector<64x128xbf16>, vector<1x128xf32> -> vector<1x128xf32>
    %150 = arith.addf %149, %9 : vector<1x128xf32>
    %151 = arith.negf %150 : vector<1x128xf32>
    %152 = math.exp %151 : vector<1x128xf32>
    %cst_30 = arith.constant 1.000000e+00 : f32
    %153 = vector.broadcast %cst_30 : f32 to vector<1x128xf32>
    %154 = arith.addf %153, %152 : vector<1x128xf32>
    %155 = arith.divf %153, %154 : vector<1x128xf32>
    %156 = math.tanh %150 : vector<1x128xf32>
    %157 = vector.extract_strided_slice %155 {offsets = [0, 0], sizes = [1, 32], strides = [1, 1]} : vector<1x128xf32> to vector<1x32xf32>
    %158 = vector.extract_strided_slice %155 {offsets = [0, 32], sizes = [1, 32], strides = [1, 1]} : vector<1x128xf32> to vector<1x32xf32>
    %159 = vector.extract_strided_slice %155 {offsets = [0, 64], sizes = [1, 32], strides = [1, 1]} : vector<1x128xf32> to vector<1x32xf32>
    %160 = vector.extract_strided_slice %156 {offsets = [0, 96], sizes = [1, 32], strides = [1, 1]} : vector<1x128xf32> to vector<1x32xf32>
    %161 = arith.mulf %158, %125 : vector<1x32xf32>
    %162 = arith.mulf %157, %160 : vector<1x32xf32>
    %163 = arith.addf %161, %162 : vector<1x32xf32>
    %164 = math.tanh %163 : vector<1x32xf32>
    %165 = arith.mulf %159, %164 : vector<1x32xf32>
    %166 = vector.extract_strided_slice %6 {offsets = [4, 0], sizes = [1, 128], strides = [1, 1]} : vector<8x128xf32> to vector<1x128xf32>
    %167 = arith.truncf %146 : vector<1x32xf32> to vector<1x32xbf16>
    %cst_31 = arith.constant dense<0.000000e+00> : vector<1x128xf32>
    %168 = tpu.matmul %167, %7, %cst_31 {dimension_numbers = #tpu.dot_dimension_numbers<[1], [0], [0], [1], [0, 0, 1, 1], [], []>} : vector<1x32xbf16>, vector<32x128xbf16>, vector<1x128xf32> -> vector<1x128xf32>
    %169 = arith.addf %166, %168 : vector<1x128xf32>
    %170 = arith.negf %169 : vector<1x128xf32>
    %171 = math.exp %170 : vector<1x128xf32>
    %cst_32 = arith.constant 1.000000e+00 : f32
    %172 = vector.broadcast %cst_32 : f32 to vector<1x128xf32>
    %173 = arith.addf %172, %171 : vector<1x128xf32>
    %174 = arith.divf %172, %173 : vector<1x128xf32>
    %175 = math.tanh %169 : vector<1x128xf32>
    %176 = vector.extract_strided_slice %174 {offsets = [0, 0], sizes = [1, 32], strides = [1, 1]} : vector<1x128xf32> to vector<1x32xf32>
    %177 = vector.extract_strided_slice %174 {offsets = [0, 32], sizes = [1, 32], strides = [1, 1]} : vector<1x128xf32> to vector<1x32xf32>
    %178 = vector.extract_strided_slice %174 {offsets = [0, 64], sizes = [1, 32], strides = [1, 1]} : vector<1x128xf32> to vector<1x32xf32>
    %179 = vector.extract_strided_slice %175 {offsets = [0, 96], sizes = [1, 32], strides = [1, 1]} : vector<1x128xf32> to vector<1x32xf32>
    %180 = arith.mulf %177, %144 : vector<1x32xf32>
    %181 = arith.mulf %176, %179 : vector<1x32xf32>
    %182 = arith.addf %180, %181 : vector<1x32xf32>
    %183 = math.tanh %182 : vector<1x32xf32>
    %184 = arith.mulf %178, %183 : vector<1x32xf32>
    %185 = tpu.concatenate %184, %165 in 1 : vector<1x32xf32>, vector<1x32xf32> -> vector<1x64xf32>
    %186 = arith.truncf %185 : vector<1x64xf32> to vector<1x64xbf16>
    %cst_33 = arith.constant dense<0.000000e+00> : vector<1x128xf32>
    %187 = tpu.matmul %186, %8, %cst_33 {dimension_numbers = #tpu.dot_dimension_numbers<[1], [0], [0], [1], [0, 0, 1, 1], [], []>} : vector<1x64xbf16>, vector<64x128xbf16>, vector<1x128xf32> -> vector<1x128xf32>
    %188 = arith.addf %187, %9 : vector<1x128xf32>
    %189 = arith.negf %188 : vector<1x128xf32>
    %190 = math.exp %189 : vector<1x128xf32>
    %cst_34 = arith.constant 1.000000e+00 : f32
    %191 = vector.broadcast %cst_34 : f32 to vector<1x128xf32>
    %192 = arith.addf %191, %190 : vector<1x128xf32>
    %193 = arith.divf %191, %192 : vector<1x128xf32>
    %194 = math.tanh %188 : vector<1x128xf32>
    %195 = vector.extract_strided_slice %193 {offsets = [0, 0], sizes = [1, 32], strides = [1, 1]} : vector<1x128xf32> to vector<1x32xf32>
    %196 = vector.extract_strided_slice %193 {offsets = [0, 32], sizes = [1, 32], strides = [1, 1]} : vector<1x128xf32> to vector<1x32xf32>
    %197 = vector.extract_strided_slice %193 {offsets = [0, 64], sizes = [1, 32], strides = [1, 1]} : vector<1x128xf32> to vector<1x32xf32>
    %198 = vector.extract_strided_slice %194 {offsets = [0, 96], sizes = [1, 32], strides = [1, 1]} : vector<1x128xf32> to vector<1x32xf32>
    %199 = arith.mulf %196, %163 : vector<1x32xf32>
    %200 = arith.mulf %195, %198 : vector<1x32xf32>
    %201 = arith.addf %199, %200 : vector<1x32xf32>
    %202 = math.tanh %201 : vector<1x32xf32>
    %203 = arith.mulf %197, %202 : vector<1x32xf32>
    %204 = vector.extract_strided_slice %6 {offsets = [5, 0], sizes = [1, 128], strides = [1, 1]} : vector<8x128xf32> to vector<1x128xf32>
    %205 = arith.truncf %184 : vector<1x32xf32> to vector<1x32xbf16>
    %cst_35 = arith.constant dense<0.000000e+00> : vector<1x128xf32>
    %206 = tpu.matmul %205, %7, %cst_35 {dimension_numbers = #tpu.dot_dimension_numbers<[1], [0], [0], [1], [0, 0, 1, 1], [], []>} : vector<1x32xbf16>, vector<32x128xbf16>, vector<1x128xf32> -> vector<1x128xf32>
    %207 = arith.addf %204, %206 : vector<1x128xf32>
    %208 = arith.negf %207 : vector<1x128xf32>
    %209 = math.exp %208 : vector<1x128xf32>
    %cst_36 = arith.constant 1.000000e+00 : f32
    %210 = vector.broadcast %cst_36 : f32 to vector<1x128xf32>
    %211 = arith.addf %210, %209 : vector<1x128xf32>
    %212 = arith.divf %210, %211 : vector<1x128xf32>
    %213 = math.tanh %207 : vector<1x128xf32>
    %214 = vector.extract_strided_slice %212 {offsets = [0, 0], sizes = [1, 32], strides = [1, 1]} : vector<1x128xf32> to vector<1x32xf32>
    %215 = vector.extract_strided_slice %212 {offsets = [0, 32], sizes = [1, 32], strides = [1, 1]} : vector<1x128xf32> to vector<1x32xf32>
    %216 = vector.extract_strided_slice %212 {offsets = [0, 64], sizes = [1, 32], strides = [1, 1]} : vector<1x128xf32> to vector<1x32xf32>
    %217 = vector.extract_strided_slice %213 {offsets = [0, 96], sizes = [1, 32], strides = [1, 1]} : vector<1x128xf32> to vector<1x32xf32>
    %218 = arith.mulf %215, %182 : vector<1x32xf32>
    %219 = arith.mulf %214, %217 : vector<1x32xf32>
    %220 = arith.addf %218, %219 : vector<1x32xf32>
    %221 = math.tanh %220 : vector<1x32xf32>
    %222 = arith.mulf %216, %221 : vector<1x32xf32>
    %223 = tpu.concatenate %222, %203 in 1 : vector<1x32xf32>, vector<1x32xf32> -> vector<1x64xf32>
    %224 = arith.truncf %223 : vector<1x64xf32> to vector<1x64xbf16>
    %cst_37 = arith.constant dense<0.000000e+00> : vector<1x128xf32>
    %225 = tpu.matmul %224, %8, %cst_37 {dimension_numbers = #tpu.dot_dimension_numbers<[1], [0], [0], [1], [0, 0, 1, 1], [], []>} : vector<1x64xbf16>, vector<64x128xbf16>, vector<1x128xf32> -> vector<1x128xf32>
    %226 = arith.addf %225, %9 : vector<1x128xf32>
    %227 = arith.negf %226 : vector<1x128xf32>
    %228 = math.exp %227 : vector<1x128xf32>
    %cst_38 = arith.constant 1.000000e+00 : f32
    %229 = vector.broadcast %cst_38 : f32 to vector<1x128xf32>
    %230 = arith.addf %229, %228 : vector<1x128xf32>
    %231 = arith.divf %229, %230 : vector<1x128xf32>
    %232 = math.tanh %226 : vector<1x128xf32>
    %233 = vector.extract_strided_slice %231 {offsets = [0, 0], sizes = [1, 32], strides = [1, 1]} : vector<1x128xf32> to vector<1x32xf32>
    %234 = vector.extract_strided_slice %231 {offsets = [0, 32], sizes = [1, 32], strides = [1, 1]} : vector<1x128xf32> to vector<1x32xf32>
    %235 = vector.extract_strided_slice %231 {offsets = [0, 64], sizes = [1, 32], strides = [1, 1]} : vector<1x128xf32> to vector<1x32xf32>
    %236 = vector.extract_strided_slice %232 {offsets = [0, 96], sizes = [1, 32], strides = [1, 1]} : vector<1x128xf32> to vector<1x32xf32>
    %237 = arith.mulf %234, %201 : vector<1x32xf32>
    %238 = arith.mulf %233, %236 : vector<1x32xf32>
    %239 = arith.addf %237, %238 : vector<1x32xf32>
    %240 = math.tanh %239 : vector<1x32xf32>
    %241 = arith.mulf %235, %240 : vector<1x32xf32>
    %242 = vector.extract_strided_slice %6 {offsets = [6, 0], sizes = [1, 128], strides = [1, 1]} : vector<8x128xf32> to vector<1x128xf32>
    %243 = arith.truncf %222 : vector<1x32xf32> to vector<1x32xbf16>
    %cst_39 = arith.constant dense<0.000000e+00> : vector<1x128xf32>
    %244 = tpu.matmul %243, %7, %cst_39 {dimension_numbers = #tpu.dot_dimension_numbers<[1], [0], [0], [1], [0, 0, 1, 1], [], []>} : vector<1x32xbf16>, vector<32x128xbf16>, vector<1x128xf32> -> vector<1x128xf32>
    %245 = arith.addf %242, %244 : vector<1x128xf32>
    %246 = arith.negf %245 : vector<1x128xf32>
    %247 = math.exp %246 : vector<1x128xf32>
    %cst_40 = arith.constant 1.000000e+00 : f32
    %248 = vector.broadcast %cst_40 : f32 to vector<1x128xf32>
    %249 = arith.addf %248, %247 : vector<1x128xf32>
    %250 = arith.divf %248, %249 : vector<1x128xf32>
    %251 = math.tanh %245 : vector<1x128xf32>
    %252 = vector.extract_strided_slice %250 {offsets = [0, 0], sizes = [1, 32], strides = [1, 1]} : vector<1x128xf32> to vector<1x32xf32>
    %253 = vector.extract_strided_slice %250 {offsets = [0, 32], sizes = [1, 32], strides = [1, 1]} : vector<1x128xf32> to vector<1x32xf32>
    %254 = vector.extract_strided_slice %250 {offsets = [0, 64], sizes = [1, 32], strides = [1, 1]} : vector<1x128xf32> to vector<1x32xf32>
    %255 = vector.extract_strided_slice %251 {offsets = [0, 96], sizes = [1, 32], strides = [1, 1]} : vector<1x128xf32> to vector<1x32xf32>
    %256 = arith.mulf %253, %220 : vector<1x32xf32>
    %257 = arith.mulf %252, %255 : vector<1x32xf32>
    %258 = arith.addf %256, %257 : vector<1x32xf32>
    %259 = math.tanh %258 : vector<1x32xf32>
    %260 = arith.mulf %254, %259 : vector<1x32xf32>
    %261 = tpu.concatenate %260, %241 in 1 : vector<1x32xf32>, vector<1x32xf32> -> vector<1x64xf32>
    %262 = arith.truncf %261 : vector<1x64xf32> to vector<1x64xbf16>
    %cst_41 = arith.constant dense<0.000000e+00> : vector<1x128xf32>
    %263 = tpu.matmul %262, %8, %cst_41 {dimension_numbers = #tpu.dot_dimension_numbers<[1], [0], [0], [1], [0, 0, 1, 1], [], []>} : vector<1x64xbf16>, vector<64x128xbf16>, vector<1x128xf32> -> vector<1x128xf32>
    %264 = arith.addf %263, %9 : vector<1x128xf32>
    %265 = arith.negf %264 : vector<1x128xf32>
    %266 = math.exp %265 : vector<1x128xf32>
    %cst_42 = arith.constant 1.000000e+00 : f32
    %267 = vector.broadcast %cst_42 : f32 to vector<1x128xf32>
    %268 = arith.addf %267, %266 : vector<1x128xf32>
    %269 = arith.divf %267, %268 : vector<1x128xf32>
    %270 = math.tanh %264 : vector<1x128xf32>
    %271 = vector.extract_strided_slice %269 {offsets = [0, 0], sizes = [1, 32], strides = [1, 1]} : vector<1x128xf32> to vector<1x32xf32>
    %272 = vector.extract_strided_slice %269 {offsets = [0, 32], sizes = [1, 32], strides = [1, 1]} : vector<1x128xf32> to vector<1x32xf32>
    %273 = vector.extract_strided_slice %269 {offsets = [0, 64], sizes = [1, 32], strides = [1, 1]} : vector<1x128xf32> to vector<1x32xf32>
    %274 = vector.extract_strided_slice %270 {offsets = [0, 96], sizes = [1, 32], strides = [1, 1]} : vector<1x128xf32> to vector<1x32xf32>
    %275 = arith.mulf %272, %239 : vector<1x32xf32>
    %276 = arith.mulf %271, %274 : vector<1x32xf32>
    %277 = arith.addf %275, %276 : vector<1x32xf32>
    %278 = math.tanh %277 : vector<1x32xf32>
    %279 = arith.mulf %273, %278 : vector<1x32xf32>
    %280 = vector.extract_strided_slice %6 {offsets = [7, 0], sizes = [1, 128], strides = [1, 1]} : vector<8x128xf32> to vector<1x128xf32>
    %281 = arith.truncf %260 : vector<1x32xf32> to vector<1x32xbf16>
    %cst_43 = arith.constant dense<0.000000e+00> : vector<1x128xf32>
    %282 = tpu.matmul %281, %7, %cst_43 {dimension_numbers = #tpu.dot_dimension_numbers<[1], [0], [0], [1], [0, 0, 1, 1], [], []>} : vector<1x32xbf16>, vector<32x128xbf16>, vector<1x128xf32> -> vector<1x128xf32>
    %283 = arith.addf %280, %282 : vector<1x128xf32>
    %284 = arith.negf %283 : vector<1x128xf32>
    %285 = math.exp %284 : vector<1x128xf32>
    %cst_44 = arith.constant 1.000000e+00 : f32
    %286 = vector.broadcast %cst_44 : f32 to vector<1x128xf32>
    %287 = arith.addf %286, %285 : vector<1x128xf32>
    %288 = arith.divf %286, %287 : vector<1x128xf32>
    %289 = math.tanh %283 : vector<1x128xf32>
    %290 = vector.extract_strided_slice %288 {offsets = [0, 0], sizes = [1, 32], strides = [1, 1]} : vector<1x128xf32> to vector<1x32xf32>
    %291 = vector.extract_strided_slice %288 {offsets = [0, 32], sizes = [1, 32], strides = [1, 1]} : vector<1x128xf32> to vector<1x32xf32>
    %292 = vector.extract_strided_slice %288 {offsets = [0, 64], sizes = [1, 32], strides = [1, 1]} : vector<1x128xf32> to vector<1x32xf32>
    %293 = vector.extract_strided_slice %289 {offsets = [0, 96], sizes = [1, 32], strides = [1, 1]} : vector<1x128xf32> to vector<1x32xf32>
    %294 = arith.mulf %291, %258 : vector<1x32xf32>
    %295 = arith.mulf %290, %293 : vector<1x32xf32>
    %296 = arith.addf %294, %295 : vector<1x32xf32>
    %297 = math.tanh %296 : vector<1x32xf32>
    %298 = arith.mulf %292, %297 : vector<1x32xf32>
    %299 = tpu.concatenate %298, %279 in 1 : vector<1x32xf32>, vector<1x32xf32> -> vector<1x64xf32>
    %300 = arith.truncf %299 : vector<1x64xf32> to vector<1x64xbf16>
    %cst_45 = arith.constant dense<0.000000e+00> : vector<1x128xf32>
    %301 = tpu.matmul %300, %8, %cst_45 {dimension_numbers = #tpu.dot_dimension_numbers<[1], [0], [0], [1], [0, 0, 1, 1], [], []>} : vector<1x64xbf16>, vector<64x128xbf16>, vector<1x128xf32> -> vector<1x128xf32>
    %302 = arith.addf %301, %9 : vector<1x128xf32>
    %303 = arith.negf %302 : vector<1x128xf32>
    %304 = math.exp %303 : vector<1x128xf32>
    %cst_46 = arith.constant 1.000000e+00 : f32
    %305 = vector.broadcast %cst_46 : f32 to vector<1x128xf32>
    %306 = arith.addf %305, %304 : vector<1x128xf32>
    %307 = arith.divf %305, %306 : vector<1x128xf32>
    %308 = math.tanh %302 : vector<1x128xf32>
    %309 = vector.extract_strided_slice %307 {offsets = [0, 0], sizes = [1, 32], strides = [1, 1]} : vector<1x128xf32> to vector<1x32xf32>
    %310 = vector.extract_strided_slice %307 {offsets = [0, 32], sizes = [1, 32], strides = [1, 1]} : vector<1x128xf32> to vector<1x32xf32>
    %311 = vector.extract_strided_slice %307 {offsets = [0, 64], sizes = [1, 32], strides = [1, 1]} : vector<1x128xf32> to vector<1x32xf32>
    %312 = vector.extract_strided_slice %308 {offsets = [0, 96], sizes = [1, 32], strides = [1, 1]} : vector<1x128xf32> to vector<1x32xf32>
    %313 = arith.mulf %310, %277 : vector<1x32xf32>
    %314 = arith.mulf %309, %312 : vector<1x32xf32>
    %315 = arith.addf %313, %314 : vector<1x32xf32>
    %316 = math.tanh %315 : vector<1x32xf32>
    %317 = arith.mulf %311, %316 : vector<1x32xf32>
    %318 = tpu.concatenate %298, %296 in 1 : vector<1x32xf32>, vector<1x32xf32> -> vector<1x64xf32>
    %c0_47 = arith.constant 0 : index
    %c0_48 = arith.constant 0 : index
    %c0_49 = arith.constant 0 : index
    %319 = vector.load %arg7[%c0_47, %c0_48, %c0_49] : memref<2x1x64xf32, #tpu.memory_space<vmem>>, vector<1x1x64xf32>
    %320 = vector.shape_cast %319 : vector<1x1x64xf32> to vector<1x64xf32>
    %321 = vector.shape_cast %318 : vector<1x64xf32> to vector<1x1x64xf32>
    tpu.vector_store %arg7[%c0_47, %c0_48, %c0_49], %321 {strides = array<i32>} : memref<2x1x64xf32, #tpu.memory_space<vmem>>, vector<1x1x64xf32>,
    %322 = tpu.concatenate %317, %315 in 1 : vector<1x32xf32>, vector<1x32xf32> -> vector<1x64xf32>
    %c1 = arith.constant 1 : index
    %c0_50 = arith.constant 0 : index
    %c0_51 = arith.constant 0 : index
    %323 = vector.load %arg7[%c1, %c0_50, %c0_51] : memref<2x1x64xf32, #tpu.memory_space<vmem>>, vector<1x1x64xf32>
    %324 = vector.shape_cast %323 : vector<1x1x64xf32> to vector<1x64xf32>
    %325 = vector.shape_cast %322 : vector<1x64xf32> to vector<1x1x64xf32>
    tpu.vector_store %arg7[%c1, %c0_50, %c0_51], %325 {strides = array<i32>} : memref<2x1x64xf32, #tpu.memory_space<vmem>>, vector<1x1x64xf32>,
    return
  }
  func.func @transform_0(%arg0: i32) -> (i32, i32) {
    %c0_i32 = arith.constant 0 : i32
    %c0_i32_0 = arith.constant 0 : i32
    %c0_i32_1 = arith.constant 0 : i32
    return %c0_i32, %c0_i32_0 : i32, i32
  }
  func.func @transform_1(%arg0: i32) -> (i32, i32) {
    %c0_i32 = arith.constant 0 : i32
    %c0_i32_0 = arith.constant 0 : i32
    %c0_i32_1 = arith.constant 0 : i32
    return %c0_i32, %c0_i32_0 : i32, i32
  }
  func.func @transform_2(%arg0: i32) -> (i32, i32) {
    %c0_i32 = arith.constant 0 : i32
    %c0_i32_0 = arith.constant 0 : i32
    %c0_i32_1 = arith.constant 0 : i32
    return %c0_i32, %c0_i32_0 : i32, i32
  }
  func.func @transform_3(%arg0: i32) -> (i32, i32) {
    %c0_i32 = arith.constant 0 : i32
    %c0_i32_0 = arith.constant 0 : i32
    %c0_i32_1 = arith.constant 0 : i32
    return %c0_i32, %c0_i32_0 : i32, i32
  }
  func.func @transform_4(%arg0: i32) -> (i32, i32) {
    %c0_i32 = arith.constant 0 : i32
    %c0_i32_0 = arith.constant 0 : i32
    %c0_i32_1 = arith.constant 0 : i32
    return %c0_i32, %c0_i32_0 : i32, i32
  }
  func.func @transform_5(%arg0: i32) -> (i32, i32) {
    %c0_i32 = arith.constant 0 : i32
    %c0_i32_0 = arith.constant 0 : i32
    %c0_i32_1 = arith.constant 0 : i32
    return %c0_i32, %c0_i32_0 : i32, i32
  }
  func.func @transform_6(%arg0: i32) -> (i32, i32, i32) {
    %c0_i32 = arith.constant 0 : i32
    %c0_i32_0 = arith.constant 0 : i32
    %c0_i32_1 = arith.constant 0 : i32
    %c0_i32_2 = arith.constant 0 : i32
    return %c0_i32, %c0_i32_0, %c0_i32_1 : i32, i32, i32
  }
}

</mosaic_0001>

<bundles_post_ra>
// kernel: elstm_forward.1
= control target key start
LH: loop header
LB: loop body
LE: loop exit
PB: predicated region body
PF: predicated region fallthrough
CT: control target
= control target key end

     0   :  { %11 = vsyncpa [#allocation3], 0  ;;  %s2384_s0 = inlined_call_operand.hbm [shape: f32[8,32], index: 0, kind: input, shape index: {}]   ;;  %s2385_s1 = inlined_call_operand.hbm [shape: bf16[32,128], index: 1, kind: input, shape index: {}]   ;;  %s2386_s2 = inlined_call_operand.hbm [shape: bf16[32,128], index: 2, kind: input, shape index: {}]   ;;  %s2387_s3 = inlined_call_operand.vmem [shape: f32[1,128], index: 3, kind: input, shape index: {}]   ;;  %s2388_s4 = inlined_call_operand.hbm [shape: bf16[64,128], index: 4, kind: input, shape index: {}]   ;;  %s2389_s5 = inlined_call_operand.vmem [shape: f32[1,128], index: 5, kind: input, shape index: {}]   ;;  %s2390_s6 = inlined_call_operand.vmem [shape: f32[2,1,64], index: 6, kind: output, shape index: {}]  }
   0x1   :  { %12 = vsyncpa [#allocation5], 0 }
   0x2   :  { %13 = vsyncpa [#allocation8], 0  ;;  %s1990_s21 = smov [#allocation4]  }
   0x3   :  { %s29_s22 = sshll.u32 %s1990_s21, 4  ;;  %s30_s22 = int_to_ptr.vmem [resolvable:$true] %s29_s22 }
   0x4   :  { %s1912_s23 = scalar_lea.vmem %s30_s22, 256  ;;  %p1917_p1 = scmp.lt.s32.totalorder %s30_s22, %s30_s22 }
   0x5   :  { %p1913_p0 = scmp.ne.s32.totalorder %s30_s22, %s1912_s23  ;;  %p1918_p2 = scmp.lt.s32.totalorder %s1912_s23, %s1912_s23 }
   0x7   :  { %p1919_p3 = por %p1918_p2, %p1917_p1 }
   0x9   :  { %p1920_p4 = pnand %p1919_p3, %p1913_p0 }
   0xb   :  { %1923 = shalt.err (!%p1920_p4)
}
   0xc   :  { %s1991_s24 = smov 64   ;;  %s1992_s25 = smov 4  }
   0xd   :  { %35 = dma.hbm_to_vmem [thread:$0]  %s2385_s1, 256, %s30_s22, [#allocation5], %s1991_s24, %s1991_s24, %s1992_s25  }
   0xe   :  { %s1993_s28 = smov [#allocation2]   ;;  %s1994_s30 = smov [#allocation6]  }
   0xf   :  { %s20_s29 = sshll.u32 %s1993_s28, 4  ;;  %s41_s7 = sshll.u32 %s1994_s30, 4  ;;  %s21_s29 = int_to_ptr.vmem [resolvable:$true] %s20_s29  ;;  %s42_s7 = int_to_ptr.vmem [resolvable:$true] %s41_s7 }
  0x10   :  { %s1932_s8 = scalar_lea.vmem %s21_s29, 128  ;;  %p1937_p6 = scmp.lt.s32.totalorder %s21_s29, %s21_s29 }
  0x11   :  { %p1933_p5 = scmp.ne.s32.totalorder %s21_s29, %s1932_s8  ;;  %p1938_p7 = scmp.lt.s32.totalorder %s1932_s8, %s1932_s8 }
  0x13   :  { %p1939_p8 = por %p1938_p7, %p1937_p6 }
  0x15   :  { %p1940_p9 = pnand %p1939_p8, %p1933_p5 }
  0x17   :  { %1943 = shalt.err (!%p1940_p9)
}
  0x18   :  { %23 = dma.hbm_to_vmem [thread:$0]  %s2384_s0, 128, %s21_s29, [#allocation3]  }
  0x19   :  { %s1952_s11 = scalar_lea.vmem %s42_s7, 256  ;;  %p1957_p11 = scmp.lt.s32.totalorder %s42_s7, %s42_s7 }
  0x1a   :  { %p1953_p10 = scmp.ne.s32.totalorder %s42_s7, %s1952_s11  ;;  %p1958_p12 = scmp.lt.s32.totalorder %s1952_s11, %s1952_s11 }
  0x1c   :  { %p1959_p13 = por %p1958_p12, %p1957_p11 }
  0x1e   :  { %p1960_p0 = pnand %p1959_p13, %p1953_p10 }
  0x20   :  { %1963 = shalt.err (!%p1960_p0)
}
  0x21   :  { %47 = dma.hbm_to_vmem [thread:$0]  %s2386_s2, 256, %s42_s7, [#allocation5], %s1991_s24, %s1991_s24, %s1992_s25  }
  0x22   :  { %s1995_s13 = smov [#allocation7]  }
  0x23   :  { %s55_s14 = sshll.u32 %s1995_s13, 4  ;;  %s56_s14 = int_to_ptr.vmem [resolvable:$true] %s55_s14 }
  0x24   :  { %s1972_s15 = scalar_lea.vmem %s56_s14, 512  ;;  %p1977_p2 = scmp.lt.s32.totalorder %s56_s14, %s56_s14 }
  0x25   :  { %p1973_p1 = scmp.ne.s32.totalorder %s56_s14, %s1972_s15  ;;  %p1978_p3 = scmp.lt.s32.totalorder %s1972_s15, %s1972_s15 }
  0x27   :  { %p1979_p4 = por %p1978_p3, %p1977_p2 }
  0x29   :  { %p1980_p5 = pnand %p1979_p4, %p1973_p1 }
  0x2b   :  { %1983 = shalt.err (!%p1980_p5)
}
  0x2c   :  { %61 = dma.hbm_to_vmem [thread:$0]  %s2388_s4, 512, %s56_s14, [#allocation8], %s1991_s24, %s1991_s24, %s1992_s25  }
  0x2d   :  { %1984 = dma.done.wait [#allocation3], 128  }
  0x2e   :  { %1985 = vsyncadd [#allocation3], 4294967168 }
  0x2f   :  { %1986 = dma.done.wait [#allocation5], 512  }
  0x30   :  { %1987 = vsyncadd [#allocation5], 4294966784 }
  0x31   :  { %1988 = dma.done.wait [#allocation8], 512  }
  0x32   :  { %1989 = vsyncadd [#allocation8], 4294966784  ;;  %v1996_v0 = vmov 0.0   ;;  %vm1997_vm0 = vmmov 0   ;;  %v1767_v1 = vld [vmem:[#allocation4 + $0x8] sm:$0xff]   ;;  %v2063_v2 = vld [vmem:[#allocation6 + $0x8] sm:$0xff]  }
  0x33   :  { %1588 = vmatprep.subr.bf16.mxu0 %v1996_v0  ;;  %1596 = vmatprep.subr.bf16.mxu1 %v1996_v0  ;;  %v1769_v3 = vld [vmem:[#allocation4] sm:$0xff]   ;;  %v2067_v4 = vld [vmem:[#allocation6] sm:$0xff]   ;;  %v77_v5 = vld [vmem:[#allocation2] sm:$0xff]  ;;  %vm102_vm1 = vcmask 261120   ;;  %v1998_v7 = vmov 0   ;;  %s1999_s17 = smov 32  }
  0x34   :  { %1592 = vmatprep.mubr.msk.bf16.mxu0 %vm1997_vm0, %v1996_v0  ;;  %1600 = vmatprep.mubr.msk.bf16.mxu1 %vm1997_vm0, %v1996_v0  ;;  %v78_v6 = vpack.c.bf16 %v77_v5, %v77_v5  ;;  %v1479_v8 = vld [vmem:[%s2387_s3] ss:$0 sm:$0xff]  ;;  %v2096_v30 = vld [vmem:[#allocation7 + $0x10] sm:$0xff]   ;;  %v2100_v31 = vld [vmem:[#allocation7 + $0x8] sm:$0xff]   ;;  %vm269_vm2 = vcmask 523264   ;;  %s2000_s19 = smov 96  }
  0x35   :  { %1589 = vmatpush3.bf16.msra.mxu0 %v1767_v1  ;;  %1597 = vmatpush3.bf16.msra.mxu1 %v2063_v2  ;;  %v2093_v29 = vld [vmem:[#allocation7 + $0x18] sm:$0xff]   ;;  %v2106_v33 = vld [vmem:[#allocation7] sm:$0xff]   ;;  %vm1462_vm3 = vcmask 523271   ;;  %vm1470_vm4 = vcmask 516096  }
  0x36   :  { %1590 = vmatprep.subr.bf16.mxu0 %v1996_v0  ;;  %1598 = vmatprep.subr.bf16.mxu1 %v1996_v0  ;;  %v2134_v41 = vld [vmem:[%s2389_s5] sm:$0x1] }
  0x39   :  { %1591 = vmatpush3.bf16.msra.mxu0 %v1769_v3  ;;  %1599 = vmatpush3.bf16.msra.mxu1 %v2067_v4 }
  0x3a   :  { %1604 = vmatprep.subr.bf16.mxu0 %v1996_v0  ;;  %1616 = vmatprep.subr.bf16.mxu1 %v1996_v0 }
  0x3c   :  { %1593 = vmatmul.mubr.msk.bf16.vlgmr.msra.gmra.mxu0 %vm102_vm1, %v78_v6  ;;  %1601 = vmatmul.mubr.bf16.vlgmr.msra.gmra.mxu1 %v1998_v7 }
  0x3d   :  { %1612 = vmatprep.mubr.msk.bf16.mxu0 %vm1997_vm0, %v1996_v0  ;;  %1617 = vmatpush3.bf16.msra.mxu1 %v2063_v2 }
  0x3e   :  { %1620 = vmatprep.mubr.msk.bf16.mxu1 %vm1997_vm0, %v1996_v0  ;;  %1618 = vmatprep.subr.bf16.mxu1 %v1996_v0 }
  0x3f   :  { %1605 = vmatpush3.bf16.msra.mxu0 %v2093_v29 }
  0x40   :  { %1606 = vmatprep.subr.bf16.mxu0 %v1996_v0 }
  0x41   :  { %1619 = vmatpush3.bf16.msra.mxu1 %v2067_v4 }
  0x42   :  { %1624 = vmatprep.subr.bf16.mxu1 %v1996_v0 }
  0x43   :  { %1607 = vmatpush3.bf16.msra.mxu0 %v2096_v30 }
  0x44   :  { %1608 = vmatprep.subr.bf16.mxu0 %v1996_v0 }
  0x47   :  { %1609 = vmatpush3.bf16.msra.mxu0 %v2100_v31 }
  0x48   :  { %1610 = vmatprep.subr.bf16.mxu0 %v1996_v0 }
  0x4b   :  { %1611 = vmatpush3.bf16.msra.mxu0 %v2106_v33 }
  0x4c   :  { %1636 = vmatprep.subr.bf16.mxu0 %v1996_v0 }
  0xfc   :  { %v140_v9 = vpop.f32.mrf.mxu0  ;;  %v208_v11 = vpop.f32.mrf.mxu1 }
  0xfd   :  { %v2085_v10 = vadd.f32 %v1479_v8, %v140_v9 }
  0xfe   :  { %v1594_v12 = vpop.f32.mrf.mxu0  ;;  %v1602_v14 = vpop.f32.mrf.mxu1 }
  0xff   :  { %v214_v13 = vadd.f32 %v208_v11, %v2085_v10 }
 0x100   :  { %v143_v15 = vpop.f32.mrf.mxu0  ;;  %v211_v16 = vpop.f32.mrf.mxu1 }
 0x101   :  { %1775 = vtanh.f32 %v214_v13  ;;  %v1485_v20 = vmul.f32 -1.442695, %v214_v13 }
 0x102   :  { %v1595_v17 = vpop.f32.mrf.mxu0  ;;  %v1603_v18 = vpop.f32.mrf.mxu1 }
 0x103   :  { %1777 = vpow2.f32 %v1485_v20 }
 0x10e   :  { %v1776_v19 = vpop.eup %1775 }
 0x10f   :  { %224 = vrot.lane.b32.xlu0 %v1776_v19, %s1999_s17 }
 0x110   :  { %v1778_v21 = vpop.eup %1777 }
 0x111   :  { %v218_v22 = vadd.f32 1.0, %v1778_v21 }
 0x113   :  { %1779 = vrcp.f32 %v218_v22 }
 0x120   :  { %v1780_v23 = vpop.eup %1779 }
 0x121   :  { %v222_v26 = vmul.f32 0.0, %v1780_v23 }
 0x181   :  { %v225_v24 = vpop.permute.xlu0 %224 }
 0x182   :  { %v227_v25 = vmul.f32 %v1780_v23, %v225_v24 }
 0x184   :  { %229 = vrot.lane.b32.xlu0 %v227_v25, %s1999_s17 }
 0x1f6   :  { %v230_v27 = vpop.permute.xlu0 %229 }
 0x1f7   :  { %v2090_v28 = vadd.f32 %v230_v27, %v222_v26 }
 0x1f9   :  { %1781 = vtanh.f32 %v2090_v28  ;;  %v396_v6 = vrot.slane %v2090_v28, 7 }
 0x206   :  { %v1782_v32 = vpop.eup %1781 }
 0x207   :  { %235 = vrot.lane.b32.xlu1 %v1782_v32, %s1999_s17 }
 0x279   :  { %v236_v34 = vpop.permute.xlu1 %235 }
 0x27a   :  { %v238_v35 = vmul.f32 %v1780_v23, %v236_v34 }
 0x27c   :  { %240 = vrot.lane.b32.xlu1 %v238_v35, %s1991_s24  ;;  %v337_v36 = vpack.c.bf16 %v238_v35, %v238_v35 }
 0x27e   :  { %339 = vrot.lane.b32.xlu0 %v337_v36, %s1991_s24 }
 0x2ee   :  { %v241_v37 = vpop.permute.xlu1 %240 }
 0x2ef   :  { %v243_v38 = vsel %vm102_vm1, %v241_v37, 0.0 }
 0x2f0   :  { %v244_v39 = vpack.c.bf16 %v243_v38, %v243_v38  ;;  %v340_v40 = vpop.permute.xlu0 %339 }
 0x2f1   :  { %1621 = vmatmul.mubr.msk.bf16.vlgmr.msra.gmra.mxu1 %vm102_vm1, %v340_v40 }
 0x2f2   :  { %1613 = vmatmul.mubr.msk.bf16.vlgmr.msra.gmra.mxu0 %vm269_vm2, %v244_v39  ;;  %1625 = vmatpush3.bf16.msra.mxu1 %v2093_v29 }
 0x2f3   :  { %1626 = vmatprep.subr.bf16.mxu1 %v1996_v0  ;;  %1637 = vmatpush3.bf16.msra.mxu0 %v2063_v2 }
 0x2f4   :  { %1638 = vmatprep.subr.bf16.mxu0 %v1996_v0  ;;  %1640 = vmatprep.mubr.msk.bf16.mxu0 %vm1997_vm0, %v1996_v0 }
 0x2f5   :  { %1632 = vmatprep.mubr.msk.bf16.mxu1 %vm1997_vm0, %v1996_v0 }
 0x2f6   :  { %1627 = vmatpush3.bf16.msra.mxu1 %v2096_v30 }
 0x2f7   :  { %1628 = vmatprep.subr.bf16.mxu1 %v1996_v0  ;;  %1639 = vmatpush3.bf16.msra.mxu0 %v2067_v4 }
 0x2f8   :  { %1644 = vmatprep.subr.bf16.mxu0 %v1996_v0 }
 0x2fa   :  { %1629 = vmatpush3.bf16.msra.mxu1 %v2100_v31 }
 0x2fb   :  { %1630 = vmatprep.subr.bf16.mxu1 %v1996_v0 }
 0x2fe   :  { %1631 = vmatpush3.bf16.msra.mxu1 %v2106_v33 }
 0x2ff   :  { %1656 = vmatprep.subr.bf16.mxu1 %v1996_v0 }
 0x3b1   :  { %v378_v42 = vpop.f32.mrf.mxu1 }
 0x3b2   :  { %v385_v43 = vrot.slane %v378_v42, 7  ;;  %v307_v44 = vpop.f32.mrf.mxu0 }
 0x3b3   :  { %v308_v45 = vadd.f32 %v307_v44, %v2134_v41  ;;  %v1622_v46 = vpop.f32.mrf.mxu1 }
 0x3b4   :  { %v387_v47 = vadd.f32 %v385_v43, %v2085_v10  ;;  %v1614_v48 = vpop.f32.mrf.mxu0 }
 0x3b5   :  { %1783 = vtanh.f32 %v308_v45  ;;  %v381_v49 = vpop.f32.mrf.mxu1  ;;  %v1491_v55 = vmul.f32 -1.442695, %v308_v45 }
 0x3b6   :  { %1785 = vtanh.f32 %v387_v47  ;;  %v310_v50 = vpop.f32.mrf.mxu0  ;;  %v1493_v56 = vmul.f32 -1.442695, %v387_v47 }
 0x3b7   :  { %v1623_v51 = vpop.f32.mrf.mxu1  ;;  %1787 = vpow2.f32 %v1491_v55 }
 0x3b8   :  { %v1615_v52 = vpop.f32.mrf.mxu0  ;;  %1789 = vpow2.f32 %v1493_v56 }
 0x3c2   :  { %v1784_v53 = vpop.eup %1783 }
 0x3c3   :  { %v1786_v54 = vpop.eup %1785  ;;  %322 = vrot.lane.b32.xlu1 %v1784_v53, %s1999_s17 }
 0x3c4   :  { %400 = vrot.lane.b32.xlu0 %v1786_v54, %s1999_s17  ;;  %v1788_v57 = vpop.eup %1787 }
 0x3c5   :  { %v1790_v58 = vpop.eup %1789  ;;  %v316_v59 = vadd.f32 1.0, %v1788_v57 }
 0x3c6   :  { %v391_v60 = vadd.f32 1.0, %v1790_v58 }
 0x3c7   :  { %1791 = vrcp.f32 %v316_v59 }
 0x3c8   :  { %1793 = vrcp.f32 %v391_v60 }
 0x3d4   :  { %v1792_v61 = vpop.eup %1791 }
 0x3d5   :  { %v1794_v63 = vpop.eup %1793  ;;  %v320_v7 = vmul.f32 0.0, %v1792_v61 }
 0x3d6   :  { %v398_v9 = vmul.f32 %v1794_v63, %v396_v6 }
 0x435   :  { %v323_v62 = vpop.permute.xlu1 %322 }
 0x436   :  { %v325_v1 = vmul.f32 %v1792_v61, %v323_v62  ;;  %v401_v3 = vpop.permute.xlu0 %400 }
 0x437   :  { %v403_v5 = vmul.f32 %v1794_v63, %v401_v3 }
 0x438   :  { %327 = vrot.lane.b32.xlu1 %v325_v1, %s1999_s17 }
 0x439   :  { %405 = vrot.lane.b32.xlu0 %v403_v5, %s1999_s17 }
 0x4aa   :  { %v328_v8 = vpop.permute.xlu1 %327 }
 0x4ab   :  { %v2143_v11 = vadd.f32 %v328_v8, %v320_v7  ;;  %v406_v12 = vpop.permute.xlu0 %405 }
 0x4ac   :  { %v2145_v13 = vadd.f32 %v406_v12, %v398_v9 }
 0x4ad   :  { %1795 = vtanh.f32 %v2143_v11 }
 0x4ae   :  { %1797 = vtanh.f32 %v2145_v13  ;;  %v557_v59 = vrot.slane %v2145_v13, 7 }
 0x4ba   :  { %v1796_v14 = vpop.eup %1795 }
 0x4bb   :  { %v1798_v15 = vpop.eup %1797  ;;  %333 = vrot.lane.b32.xlu1 %v1796_v14, %s1999_s17 }
 0x4bc   :  { %411 = vrot.lane.b32.xlu0 %v1798_v15, %s1999_s17 }
 0x52d   :  { %v334_v16 = vpop.permute.xlu1 %333 }
 0x52e   :  { %v336_v17 = vmul.f32 %v1792_v61, %v334_v16  ;;  %v412_v18 = vpop.permute.xlu0 %411 }
 0x52f   :  { %v414_v19 = vmul.f32 %v1794_v63, %v412_v18 }
 0x530   :  { %v420_v20 = vrot.slane %v336_v17, 7 }
 0x531   :  { %416 = vrot.lane.b32.xlu1 %v414_v19, %s1991_s24  ;;  %v496_v21 = vpack.c.bf16 %v414_v19, %v414_v19 }
 0x532   :  { %421 = vrot.lane.b32.xlu0 %v420_v20, %s2000_s19 }
 0x533   :  { %v498_v22 = vshrl.u32 %v496_v21, 16 }
 0x535   :  { %500 = vrot.lane.b32.xlu1 %v498_v22, %s1991_s24 }
 0x5a3   :  { %v417_v23 = vpop.permute.xlu1 %416 }
 0x5a4   :  { %v422_v24 = vpop.permute.xlu0 %421 }
 0x5a5   :  { %v424_v25 = vsel %vm102_vm1, %v417_v23, %v422_v24 }
 0x5a6   :  { %v425_v26 = vpack.c.bf16 %v424_v25, %v424_v25 }
 0x5a7   :  { %v501_v27 = vpop.permute.xlu1 %500 }
 0x5a8   :  { %v427_v28 = vshrl.u32 %v425_v26, 16  ;;  %1641 = vmatmul.mubr.msk.bf16.vlgmr.msra.gmra.mxu0 %vm102_vm1, %v501_v27 }
 0x5a9   :  { %1645 = vmatpush3.bf16.msra.mxu0 %v2093_v29  ;;  %1652 = vmatprep.mubr.msk.bf16.mxu0 %vm1997_vm0, %v1996_v0 }
 0x5aa   :  { %1633 = vmatmul.mubr.msk.bf16.vlgmr.msra.gmra.mxu1 %vm269_vm2, %v427_v28  ;;  %1646 = vmatprep.subr.bf16.mxu0 %v1996_v0 }
 0x5ab   :  { %1657 = vmatpush3.bf16.msra.mxu1 %v2063_v2  ;;  %1660 = vmatprep.mubr.msk.bf16.mxu1 %vm1997_vm0, %v1996_v0 }
 0x5ac   :  { %1658 = vmatprep.subr.bf16.mxu1 %v1996_v0 }
 0x5ad   :  { %1647 = vmatpush3.bf16.msra.mxu0 %v2096_v30 }
 0x5ae   :  { %1648 = vmatprep.subr.bf16.mxu0 %v1996_v0 }
 0x5af   :  { %1659 = vmatpush3.bf16.msra.mxu1 %v2067_v4 }
 0x5b0   :  { %1664 = vmatprep.subr.bf16.mxu1 %v1996_v0 }
 0x5b1   :  { %1649 = vmatpush3.bf16.msra.mxu0 %v2100_v31 }
 0x5b2   :  { %1650 = vmatprep.subr.bf16.mxu0 %v1996_v0 }
 0x5b5   :  { %1651 = vmatpush3.bf16.msra.mxu0 %v2106_v33 }
 0x5b6   :  { %1676 = vmatprep.subr.bf16.mxu0 %v1996_v0 }
 0x668   :  { %v539_v32 = vpop.f32.mrf.mxu0 }
 0x669   :  { %v546_v34 = vrot.slane %v539_v32, 6 }
 0x66a   :  { %v466_v35 = vpop.f32.mrf.mxu1  ;;  %v1642_v36 = vpop.f32.mrf.mxu0 }
 0x66b   :  { %v548_v37 = vadd.f32 %v546_v34, %v2085_v10  ;;  %v467_v38 = vadd.f32 %v466_v35, %v2134_v41 }
 0x66c   :  { %v1634_v39 = vpop.f32.mrf.mxu1  ;;  %v542_v40 = vpop.f32.mrf.mxu0 }
 0x66d   :  { %1799 = vtanh.f32 %v548_v37  ;;  %v1497_v47 = vmul.f32 -1.442695, %v548_v37  ;;  %v1495_v48 = vmul.f32 -1.442695, %v467_v38 }
 0x66e   :  { %1801 = vtanh.f32 %v467_v38  ;;  %v469_v42 = vpop.f32.mrf.mxu1  ;;  %v1643_v43 = vpop.f32.mrf.mxu0 }
 0x66f   :  { %1803 = vpow2.f32 %v1497_v47 }
 0x670   :  { %v1635_v44 = vpop.f32.mrf.mxu1  ;;  %1805 = vpow2.f32 %v1495_v48 }
 0x67a   :  { %v1800_v45 = vpop.eup %1799 }
 0x67b   :  { %v1802_v46 = vpop.eup %1801  ;;  %561 = vrot.lane.b32.xlu1 %v1800_v45, %s1999_s17 }
 0x67c   :  { %481 = vrot.lane.b32.xlu0 %v1802_v46, %s1999_s17  ;;  %v1804_v49 = vpop.eup %1803 }
 0x67d   :  { %v1806_v50 = vpop.eup %1805  ;;  %v552_v51 = vadd.f32 1.0, %v1804_v49 }
 0x67e   :  { %v475_v52 = vadd.f32 1.0, %v1806_v50 }
 0x67f   :  { %1807 = vrcp.f32 %v552_v51 }
 0x680   :  { %1809 = vrcp.f32 %v475_v52 }
 0x68c   :  { %v1808_v53 = vpop.eup %1807 }
 0x68d   :  { %v1810_v55 = vpop.eup %1809  ;;  %v559_v60 = vmul.f32 %v1808_v53, %v557_v59 }
 0x68e   :  { %v479_v61 = vmul.f32 %v1810_v55, %v2143_v11 }
 0x6ed   :  { %v562_v54 = vpop.permute.xlu1 %561 }
 0x6ee   :  { %v482_v56 = vpop.permute.xlu0 %481  ;;  %v564_v57 = vmul.f32 %v1808_v53, %v562_v54 }
 0x6ef   :  { %v484_v58 = vmul.f32 %v1810_v55, %v482_v56 }
 0x6f0   :  { %566 = vrot.lane.b32.xlu1 %v564_v57, %s1999_s17 }
 0x6f1   :  { %486 = vrot.lane.b32.xlu0 %v484_v58, %s1999_s17 }
 0x762   :  { %v567_v62 = vpop.permute.xlu1 %566 }
 0x763   :  { %v487_v63 = vpop.permute.xlu0 %486  ;;  %v2181_v1 = vadd.f32 %v567_v62, %v559_v60 }
 0x764   :  { %v2183_v3 = vadd.f32 %v487_v63, %v479_v61 }
 0x765   :  { %1811 = vtanh.f32 %v2181_v1  ;;  %v716_v51 = vrot.slane %v2181_v1, 7 }
 0x766   :  { %1813 = vtanh.f32 %v2183_v3 }
 0x772   :  { %v1812_v5 = vpop.eup %1811 }
 0x773   :  { %v1814_v6 = vpop.eup %1813  ;;  %572 = vrot.lane.b32.xlu1 %v1812_v5, %s1999_s17 }
 0x774   :  { %492 = vrot.lane.b32.xlu0 %v1814_v6, %s1999_s17 }
 0x7e5   :  { %v573_v7 = vpop.permute.xlu1 %572 }
 0x7e6   :  { %v493_v8 = vpop.permute.xlu0 %492  ;;  %v575_v9 = vmul.f32 %v1808_v53, %v573_v7 }
 0x7e7   :  { %v495_v11 = vmul.f32 %v1810_v55, %v493_v8 }
 0x7e8   :  { %577 = vrot.lane.b32.xlu0 %v575_v9, %s1991_s24  ;;  %v656_v12 = vpack.c.bf16 %v575_v9, %v575_v9 }
 0x7e9   :  { %v581_v13 = vrot.slane %v495_v11, 6 }
 0x7ea   :  { %v658_v14 = vrot.slane %v656_v12, 1 }
 0x7eb   :  { %582 = vrot.lane.b32.xlu1 %v581_v13, %s2000_s19 }
 0x7ec   :  { %659 = vrot.lane.b32.xlu0 %v658_v14, %s1991_s24 }
 0x85a   :  { %v578_v15 = vpop.permute.xlu0 %577 }
 0x85d   :  { %v583_v16 = vpop.permute.xlu1 %582 }
 0x85e   :  { %v585_v17 = vsel %vm102_vm1, %v578_v15, %v583_v16  ;;  %v660_v18 = vpop.permute.xlu0 %659 }
 0x85f   :  { %v586_v19 = vpack.c.bf16 %v585_v17, %v585_v17  ;;  %1661 = vmatmul.mubr.msk.bf16.vlgmr.msra.gmra.mxu1 %vm102_vm1, %v660_v18 }
 0x860   :  { %1665 = vmatpush3.bf16.msra.mxu1 %v2093_v29  ;;  %1672 = vmatprep.mubr.msk.bf16.mxu1 %vm1997_vm0, %v1996_v0 }
 0x861   :  { %v588_v20 = vrot.slane %v586_v19, 1  ;;  %1666 = vmatprep.subr.bf16.mxu1 %v1996_v0 }
 0x863   :  { %1653 = vmatmul.mubr.msk.bf16.vlgmr.msra.gmra.mxu0 %vm269_vm2, %v588_v20 }
 0x864   :  { %1667 = vmatpush3.bf16.msra.mxu1 %v2096_v30  ;;  %1677 = vmatpush3.bf16.msra.mxu0 %v2063_v2 }
 0x865   :  { %1668 = vmatprep.subr.bf16.mxu1 %v1996_v0  ;;  %1678 = vmatprep.subr.bf16.mxu0 %v1996_v0 }
 0x866   :  { %1680 = vmatprep.mubr.msk.bf16.mxu0 %vm1997_vm0, %v1996_v0 }
 0x868   :  { %1669 = vmatpush3.bf16.msra.mxu1 %v2100_v31  ;;  %1679 = vmatpush3.bf16.msra.mxu0 %v2067_v4 }
 0x869   :  { %1670 = vmatprep.subr.bf16.mxu1 %v1996_v0  ;;  %1684 = vmatprep.subr.bf16.mxu0 %v1996_v0 }
 0x86c   :  { %1671 = vmatpush3.bf16.msra.mxu1 %v2106_v33 }
 0x86d   :  { %1696 = vmatprep.subr.bf16.mxu1 %v1996_v0 }
 0x91f   :  { %v698_v21 = vpop.f32.mrf.mxu1 }
 0x920   :  { %v705_v22 = vrot.slane %v698_v21, 5 }
 0x921   :  { %v1662_v23 = vpop.f32.mrf.mxu1 }
 0x922   :  { %v707_v24 = vadd.f32 %v705_v22, %v2085_v10 }
 0x923   :  { %v626_v25 = vpop.f32.mrf.mxu0  ;;  %v701_v26 = vpop.f32.mrf.mxu1 }
 0x924   :  { %1815 = vtanh.f32 %v707_v24  ;;  %v627_v27 = vadd.f32 %v626_v25, %v2134_v41  ;;  %v1501_v38 = vmul.f32 -1.442695, %v707_v24 }
 0x925   :  { %v1654_v28 = vpop.f32.mrf.mxu0  ;;  %v1663_v32 = vpop.f32.mrf.mxu1 }
 0x926   :  { %1817 = vtanh.f32 %v627_v27  ;;  %v1499_v39 = vmul.f32 -1.442695, %v627_v27 }
 0x927   :  { %v629_v34 = vpop.f32.mrf.mxu0  ;;  %1819 = vpow2.f32 %v1501_v38 }
 0x928   :  { %1821 = vpow2.f32 %v1499_v39 }
 0x929   :  { %v1655_v35 = vpop.f32.mrf.mxu0 }
 0x931   :  { %v1816_v36 = vpop.eup %1815 }
 0x932   :  { %720 = vrot.lane.b32.xlu0 %v1816_v36, %s1999_s17 }
 0x933   :  { %v1818_v37 = vpop.eup %1817 }
 0x934   :  { %641 = vrot.lane.b32.xlu1 %v1818_v37, %s1999_s17  ;;  %v1820_v40 = vpop.eup %1819 }
 0x935   :  { %v1822_v42 = vpop.eup %1821  ;;  %v711_v43 = vadd.f32 1.0, %v1820_v40 }
 0x936   :  { %v635_v44 = vadd.f32 1.0, %v1822_v42 }
 0x937   :  { %1823 = vrcp.f32 %v711_v43 }
 0x938   :  { %1825 = vrcp.f32 %v635_v44 }
 0x944   :  { %v1824_v45 = vpop.eup %1823 }
 0x945   :  { %v1826_v48 = vpop.eup %1825  ;;  %v718_v52 = vmul.f32 %v1824_v45, %v716_v51 }
 0x946   :  { %v639_v55 = vmul.f32 %v1826_v48, %v2183_v3 }
 0x9a4   :  { %v721_v46 = vpop.permute.xlu0 %720 }
 0x9a5   :  { %v723_v47 = vmul.f32 %v1824_v45, %v721_v46 }
 0x9a6   :  { %v642_v49 = vpop.permute.xlu1 %641 }
 0x9a7   :  { %725 = vrot.lane.b32.xlu0 %v723_v47, %s1999_s17  ;;  %v644_v50 = vmul.f32 %v1826_v48, %v642_v49 }
 0x9a9   :  { %646 = vrot.lane.b32.xlu1 %v644_v50, %s1999_s17 }
 0xa19   :  { %v726_v53 = vpop.permute.xlu0 %725 }
 0xa1a   :  { %v2218_v54 = vadd.f32 %v726_v53, %v718_v52 }
 0xa1b   :  { %v647_v56 = vpop.permute.xlu1 %646 }
 0xa1c   :  { %1827 = vtanh.f32 %v2218_v54  ;;  %v2222_v57 = vadd.f32 %v647_v56, %v639_v55 }
 0xa1e   :  { %1829 = vtanh.f32 %v2222_v57 }
 0xa29   :  { %v1828_v58 = vpop.eup %1827 }
 0xa2a   :  { %731 = vrot.lane.b32.xlu0 %v1828_v58, %s1999_s17 }
 0xa2b   :  { %v1830_v59 = vpop.eup %1829 }
 0xa2c   :  { %652 = vrot.lane.b32.xlu1 %v1830_v59, %s1999_s17 }
 0xa9c   :  { %v732_v60 = vpop.permute.xlu0 %731 }
 0xa9d   :  { %v734_v61 = vmul.f32 %v1824_v45, %v732_v60  ;;  %v879_v45 = vrot.slane %v2218_v54, 7 }
 0xa9e   :  { %v653_v62 = vpop.permute.xlu1 %652 }
 0xa9f   :  { %736 = vrot.lane.b32.xlu1 %v734_v61, %s1991_s24  ;;  %v817_v63 = vpack.c.bf16 %v734_v61, %v734_v61  ;;  %v655_v1 = vmul.f32 %v1826_v48, %v653_v62 }
 0xaa1   :  { %v819_v3 = vshrl.u32 %v817_v63, 16  ;;  %v740_v5 = vrot.slane %v655_v1, 5 }
 0xaa3   :  { %v821_v6 = vrot.slane %v819_v3, 1  ;;  %741 = vrot.lane.b32.xlu0 %v740_v5, %s2000_s19 }
 0xaa5   :  { %822 = vrot.lane.b32.xlu1 %v821_v6, %s1991_s24 }
 0xb11   :  { %v737_v7 = vpop.permute.xlu1 %736 }
 0xb15   :  { %v742_v8 = vpop.permute.xlu0 %741 }
 0xb16   :  { %v744_v9 = vsel %vm102_vm1, %v737_v7, %v742_v8 }
 0xb17   :  { %v823_v11 = vpop.permute.xlu1 %822  ;;  %v745_v12 = vpack.c.bf16 %v744_v9, %v744_v9 }
 0xb18   :  { %1681 = vmatmul.mubr.msk.bf16.vlgmr.msra.gmra.mxu0 %vm102_vm1, %v823_v11 }
 0xb19   :  { %1685 = vmatpush3.bf16.msra.mxu0 %v2093_v29  ;;  %1692 = vmatprep.mubr.msk.bf16.mxu0 %vm1997_vm0, %v1996_v0  ;;  %v747_v13 = vshrl.u32 %v745_v12, 16 }
 0xb1a   :  { %1686 = vmatprep.subr.bf16.mxu0 %v1996_v0 }
 0xb1b   :  { %v749_v14 = vrot.slane %v747_v13, 1 }
 0xb1d   :  { %1687 = vmatpush3.bf16.msra.mxu0 %v2096_v30  ;;  %1673 = vmatmul.mubr.msk.bf16.vlgmr.msra.gmra.mxu1 %vm269_vm2, %v749_v14 }
 0xb1e   :  { %1688 = vmatprep.subr.bf16.mxu0 %v1996_v0  ;;  %1697 = vmatpush3.bf16.msra.mxu1 %v2063_v2 }
 0xb1f   :  { %1700 = vmatprep.mubr.msk.bf16.mxu1 %vm1997_vm0, %v1996_v0  ;;  %1698 = vmatprep.subr.bf16.mxu1 %v1996_v0 }
 0xb21   :  { %1689 = vmatpush3.bf16.msra.mxu0 %v2100_v31 }
 0xb22   :  { %1690 = vmatprep.subr.bf16.mxu0 %v1996_v0  ;;  %1699 = vmatpush3.bf16.msra.mxu1 %v2067_v4 }
 0xb23   :  { %1704 = vmatprep.subr.bf16.mxu1 %v1996_v0 }
 0xb25   :  { %1691 = vmatpush3.bf16.msra.mxu0 %v2106_v33 }
 0xb26   :  { %1716 = vmatprep.subr.bf16.mxu0 %v1996_v0 }
 0xbd8   :  { %v861_v15 = vpop.f32.mrf.mxu0 }
 0xbd9   :  { %v868_v16 = vrot.slane %v861_v15, 4 }
 0xbda   :  { %v1682_v17 = vpop.f32.mrf.mxu0 }
 0xbdb   :  { %v870_v18 = vadd.f32 %v868_v16, %v2085_v10 }
 0xbdc   :  { %v864_v19 = vpop.f32.mrf.mxu0 }
 0xbdd   :  { %1831 = vtanh.f32 %v870_v18  ;;  %v787_v20 = vpop.f32.mrf.mxu1  ;;  %v1505_v28 = vmul.f32 -1.442695, %v870_v18 }
 0xbde   :  { %v1683_v21 = vpop.f32.mrf.mxu0  ;;  %v788_v22 = vadd.f32 %v787_v20, %v2134_v41 }
 0xbdf   :  { %v1674_v23 = vpop.f32.mrf.mxu1 }
 0xbe0   :  { %1833 = vtanh.f32 %v788_v22  ;;  %v1503_v32 = vmul.f32 -1.442695, %v788_v22 }
 0xbe1   :  { %v790_v24 = vpop.f32.mrf.mxu1  ;;  %1835 = vpow2.f32 %v1505_v28 }
 0xbe2   :  { %1837 = vpow2.f32 %v1503_v32 }
 0xbe3   :  { %v1675_v25 = vpop.f32.mrf.mxu1 }
 0xbea   :  { %v1832_v26 = vpop.eup %1831 }
 0xbeb   :  { %883 = vrot.lane.b32.xlu1 %v1832_v26, %s1999_s17 }
 0xbed   :  { %v1834_v27 = vpop.eup %1833 }
 0xbee   :  { %802 = vrot.lane.b32.xlu0 %v1834_v27, %s1999_s17  ;;  %v1836_v34 = vpop.eup %1835 }
 0xbef   :  { %v874_v35 = vadd.f32 1.0, %v1836_v34  ;;  %v1838_v36 = vpop.eup %1837 }
 0xbf0   :  { %v796_v37 = vadd.f32 1.0, %v1838_v36 }
 0xbf1   :  { %1839 = vrcp.f32 %v874_v35 }
 0xbf2   :  { %1841 = vrcp.f32 %v796_v37 }
 0xbfe   :  { %v1840_v38 = vpop.eup %1839 }
 0xbff   :  { %v1842_v42 = vpop.eup %1841  ;;  %v881_v46 = vmul.f32 %v1840_v38, %v879_v45 }
 0xc00   :  { %v800_v49 = vmul.f32 %v1842_v42, %v2222_v57 }
 0xc5d   :  { %v884_v39 = vpop.permute.xlu1 %883 }
 0xc5e   :  { %v886_v40 = vmul.f32 %v1840_v38, %v884_v39 }
 0xc60   :  { %888 = vrot.lane.b32.xlu1 %v886_v40, %s1999_s17  ;;  %v803_v43 = vpop.permute.xlu0 %802 }
 0xc61   :  { %v805_v44 = vmul.f32 %v1842_v42, %v803_v43 }
 0xc63   :  { %807 = vrot.lane.b32.xlu0 %v805_v44, %s1999_s17 }
 0xcd2   :  { %v889_v47 = vpop.permute.xlu1 %888 }
 0xcd3   :  { %v2256_v48 = vadd.f32 %v889_v47, %v881_v46 }
 0xcd5   :  { %1843 = vtanh.f32 %v2256_v48  ;;  %v808_v50 = vpop.permute.xlu0 %807  ;;  %v1038_v36 = vrot.slane %v2256_v48, 7 }
 0xcd6   :  { %v2260_v51 = vadd.f32 %v808_v50, %v800_v49 }
 0xcd8   :  { %1845 = vtanh.f32 %v2260_v51 }
 0xce2   :  { %v1844_v52 = vpop.eup %1843 }
 0xce3   :  { %894 = vrot.lane.b32.xlu1 %v1844_v52, %s1999_s17 }
 0xce5   :  { %v1846_v53 = vpop.eup %1845 }
 0xce6   :  { %813 = vrot.lane.b32.xlu0 %v1846_v53, %s1999_s17 }
 0xd55   :  { %v895_v54 = vpop.permute.xlu1 %894 }
 0xd56   :  { %v897_v55 = vmul.f32 %v1840_v38, %v895_v54 }
 0xd58   :  { %899 = vrot.lane.b32.xlu0 %v897_v55, %s1991_s24  ;;  %v978_v56 = vpack.c.bf16 %v897_v55, %v897_v55  ;;  %v814_v58 = vpop.permute.xlu0 %813 }
 0xd59   :  { %v816_v59 = vmul.f32 %v1842_v42, %v814_v58 }
 0xd5a   :  { %v980_v60 = vrot.slane %v978_v56, 2 }
 0xd5b   :  { %v903_v57 = vrot.slane %v816_v59, 4 }
 0xd5c   :  { %981 = vrot.lane.b32.xlu0 %v980_v60, %s1991_s24 }
 0xd5d   :  { %904 = vrot.lane.b32.xlu1 %v903_v57, %s2000_s19 }
 0xdca   :  { %v900_v61 = vpop.permute.xlu0 %899 }
 0xdce   :  { %v982_v62 = vpop.permute.xlu0 %981 }
 0xdcf   :  { %1701 = vmatmul.mubr.msk.bf16.vlgmr.msra.gmra.mxu1 %vm102_vm1, %v982_v62  ;;  %v905_v63 = vpop.permute.xlu1 %904 }
 0xdd0   :  { %1705 = vmatpush3.bf16.msra.mxu1 %v2093_v29  ;;  %1712 = vmatprep.mubr.msk.bf16.mxu1 %vm1997_vm0, %v1996_v0  ;;  %v907_v1 = vsel %vm102_vm1, %v900_v61, %v905_v63 }
 0xdd1   :  { %1706 = vmatprep.subr.bf16.mxu1 %v1996_v0  ;;  %v908_v3 = vpack.c.bf16 %v907_v1, %v907_v1 }
 0xdd3   :  { %v910_v5 = vrot.slane %v908_v3, 2 }
 0xdd4   :  { %1707 = vmatpush3.bf16.msra.mxu1 %v2096_v30 }
 0xdd5   :  { %1708 = vmatprep.subr.bf16.mxu1 %v1996_v0  ;;  %1693 = vmatmul.mubr.msk.bf16.vlgmr.msra.gmra.mxu0 %vm269_vm2, %v910_v5 }
 0xdd6   :  { %1717 = vmatpush3.bf16.msra.mxu0 %v2063_v2  ;;  %1720 = vmatprep.mubr.msk.bf16.mxu0 %vm1997_vm0, %v1996_v0 }
 0xdd7   :  { %1718 = vmatprep.subr.bf16.mxu0 %v1996_v0 }
 0xdd8   :  { %1709 = vmatpush3.bf16.msra.mxu1 %v2100_v31 }
 0xdd9   :  { %1710 = vmatprep.subr.bf16.mxu1 %v1996_v0 }
 0xdda   :  { %1719 = vmatpush3.bf16.msra.mxu0 %v2067_v4 }
 0xddb   :  { %1724 = vmatprep.subr.bf16.mxu0 %v1996_v0 }
 0xddc   :  { %1711 = vmatpush3.bf16.msra.mxu1 %v2106_v33 }
 0xddd   :  { %1736 = vmatprep.subr.bf16.mxu1 %v1996_v0 }
 0xe8f   :  { %v1020_v6 = vpop.f32.mrf.mxu1 }
 0xe90   :  { %v1027_v7 = vrot.slane %v1020_v6, 3 }
 0xe91   :  { %v1702_v8 = vpop.f32.mrf.mxu1 }
 0xe92   :  { %v1029_v9 = vadd.f32 %v1027_v7, %v2085_v10 }
 0xe93   :  { %v1023_v11 = vpop.f32.mrf.mxu1 }
 0xe94   :  { %1847 = vtanh.f32 %v1029_v9  ;;  %v1509_v20 = vmul.f32 -1.442695, %v1029_v9 }
 0xe95   :  { %v1703_v12 = vpop.f32.mrf.mxu1  ;;  %v948_v13 = vpop.f32.mrf.mxu0 }
 0xe96   :  { %v949_v14 = vadd.f32 %v948_v13, %v2134_v41 }
 0xe97   :  { %v1694_v15 = vpop.f32.mrf.mxu0 }
 0xe98   :  { %1849 = vtanh.f32 %v949_v14  ;;  %v1507_v21 = vmul.f32 -1.442695, %v949_v14 }
 0xe99   :  { %v951_v16 = vpop.f32.mrf.mxu0  ;;  %1851 = vpow2.f32 %v1509_v20 }
 0xe9a   :  { %1853 = vpow2.f32 %v1507_v21 }
 0xe9b   :  { %v1695_v17 = vpop.f32.mrf.mxu0 }
 0xea1   :  { %v1848_v18 = vpop.eup %1847 }
 0xea2   :  { %1042 = vrot.lane.b32.xlu0 %v1848_v18, %s1999_s17 }
 0xea5   :  { %v1850_v19 = vpop.eup %1849 }
 0xea6   :  { %963 = vrot.lane.b32.xlu1 %v1850_v19, %s1999_s17  ;;  %v1852_v22 = vpop.eup %1851 }
 0xea7   :  { %v1033_v23 = vadd.f32 1.0, %v1852_v22  ;;  %v1854_v24 = vpop.eup %1853 }
 0xea8   :  { %v957_v25 = vadd.f32 1.0, %v1854_v24 }
 0xea9   :  { %1855 = vrcp.f32 %v1033_v23 }
 0xeaa   :  { %1857 = vrcp.f32 %v957_v25 }
 0xeb6   :  { %v1856_v26 = vpop.eup %1855 }
 0xeb7   :  { %v1858_v32 = vpop.eup %1857  ;;  %v1040_v37 = vmul.f32 %v1856_v26, %v1038_v36 }
 0xeb8   :  { %v961_v40 = vmul.f32 %v1858_v32, %v2260_v51 }
 0xf14   :  { %v1043_v27 = vpop.permute.xlu0 %1042 }
 0xf15   :  { %v1045_v28 = vmul.f32 %v1856_v26, %v1043_v27 }
 0xf17   :  { %1047 = vrot.lane.b32.xlu0 %v1045_v28, %s1999_s17 }
 0xf18   :  { %v964_v34 = vpop.permute.xlu1 %963 }
 0xf19   :  { %v966_v35 = vmul.f32 %v1858_v32, %v964_v34 }
 0xf1b   :  { %968 = vrot.lane.b32.xlu1 %v966_v35, %s1999_s17 }
 0xf89   :  { %v1048_v38 = vpop.permute.xlu0 %1047 }
 0xf8a   :  { %v2294_v39 = vadd.f32 %v1048_v38, %v1040_v37 }
 0xf8c   :  { %1859 = vtanh.f32 %v2294_v39  ;;  %v1201_v24 = vrot.slane %v2294_v39, 7 }
 0xf8d   :  { %v969_v42 = vpop.permute.xlu1 %968 }
 0xf8e   :  { %v2298_v43 = vadd.f32 %v969_v42, %v961_v40 }
 0xf90   :  { %1861 = vtanh.f32 %v2298_v43 }
 0xf99   :  { %v1860_v44 = vpop.eup %1859 }
 0xf9a   :  { %1053 = vrot.lane.b32.xlu0 %v1860_v44, %s1999_s17 }
 0xf9d   :  { %v1862_v45 = vpop.eup %1861 }
 0xf9e   :  { %974 = vrot.lane.b32.xlu1 %v1862_v45, %s1999_s17 }
0x100c   :  { %v1054_v46 = vpop.permute.xlu0 %1053 }
0x100d   :  { %v1056_v47 = vmul.f32 %v1856_v26, %v1054_v46 }
0x100f   :  { %1058 = vrot.lane.b32.xlu1 %v1056_v47, %s1991_s24  ;;  %v1139_v48 = vpack.c.bf16 %v1056_v47, %v1056_v47 }
0x1010   :  { %v975_v49 = vpop.permute.xlu1 %974 }
0x1011   :  { %v1141_v50 = vshrl.u32 %v1139_v48, 16  ;;  %v977_v52 = vmul.f32 %v1858_v32, %v975_v49 }
0x1013   :  { %v1143_v51 = vrot.slane %v1141_v50, 2  ;;  %v1062_v53 = vrot.slane %v977_v52, 3 }
0x1015   :  { %1144 = vrot.lane.b32.xlu1 %v1143_v51, %s1991_s24  ;;  %1063 = vrot.lane.b32.xlu0 %v1062_v53, %s2000_s19 }
0x1081   :  { %v1059_v54 = vpop.permute.xlu1 %1058 }
0x1087   :  { %v1145_v55 = vpop.permute.xlu1 %1144  ;;  %v1064_v56 = vpop.permute.xlu0 %1063 }
0x1088   :  { %1721 = vmatmul.mubr.msk.bf16.vlgmr.msra.gmra.mxu0 %vm102_vm1, %v1145_v55  ;;  %v1066_v58 = vsel %vm102_vm1, %v1059_v54, %v1064_v56 }
0x1089   :  { %1725 = vmatpush3.bf16.msra.mxu0 %v2093_v29  ;;  %1732 = vmatprep.mubr.msk.bf16.mxu0 %vm1997_vm0, %v1996_v0  ;;  %v1067_v59 = vpack.c.bf16 %v1066_v58, %v1066_v58 }
0x108a   :  { %1726 = vmatprep.subr.bf16.mxu0 %v1996_v0 }
0x108b   :  { %v1069_v60 = vshrl.u32 %v1067_v59, 16 }
0x108d   :  { %1727 = vmatpush3.bf16.msra.mxu0 %v2096_v30  ;;  %v1071_v57 = vrot.slane %v1069_v60, 2 }
0x108e   :  { %1728 = vmatprep.subr.bf16.mxu0 %v1996_v0 }
0x108f   :  { %1713 = vmatmul.mubr.msk.bf16.vlgmr.msra.gmra.mxu1 %vm269_vm2, %v1071_v57 }
0x1090   :  { %1737 = vmatpush3.bf16.msra.mxu1 %v2063_v2  ;;  %1740 = vmatprep.mubr.msk.bf16.mxu1 %vm1997_vm0, %v1996_v0 }
0x1091   :  { %1738 = vmatprep.subr.bf16.mxu1 %v1996_v0  ;;  %1729 = vmatpush3.bf16.msra.mxu0 %v2100_v31 }
0x1092   :  { %1730 = vmatprep.subr.bf16.mxu0 %v1996_v0 }
0x1094   :  { %1739 = vmatpush3.bf16.msra.mxu1 %v2067_v4 }
0x1095   :  { %1731 = vmatpush3.bf16.msra.mxu0 %v2106_v33  ;;  %1744 = vmatprep.subr.bf16.mxu1 %v1996_v0 }
0x1148   :  { %v1183_v61 = vpop.f32.mrf.mxu0 }
0x1149   :  { %v1190_v62 = vrot.slane %v1183_v61, 2 }
0x114a   :  { %v1722_v63 = vpop.f32.mrf.mxu0 }
0x114b   :  { %v1192_v2 = vadd.f32 %v1190_v62, %v2085_v10 }
0x114c   :  { %v1186_v1 = vpop.f32.mrf.mxu0 }
0x114d   :  { %1863 = vtanh.f32 %v1192_v2  ;;  %v1513_v12 = vmul.f32 -1.442695, %v1192_v2 }
0x114e   :  { %v1723_v3 = vpop.f32.mrf.mxu0 }
0x114f   :  { %v1109_v5 = vpop.f32.mrf.mxu1 }
0x1150   :  { %v1110_v6 = vadd.f32 %v1109_v5, %v2134_v41 }
0x1151   :  { %v1714_v7 = vpop.f32.mrf.mxu1 }
0x1152   :  { %1865 = vtanh.f32 %v1110_v6  ;;  %v1511_v13 = vmul.f32 -1.442695, %v1110_v6 }
0x1153   :  { %v1112_v8 = vpop.f32.mrf.mxu1  ;;  %1867 = vpow2.f32 %v1513_v12 }
0x1154   :  { %1869 = vpow2.f32 %v1511_v13 }
0x1155   :  { %v1715_v9 = vpop.f32.mrf.mxu1 }
0x115a   :  { %v1864_v4 = vpop.eup %1863 }
0x115b   :  { %1205 = vrot.lane.b32.xlu1 %v1864_v4, %s1999_s17 }
0x115f   :  { %v1866_v11 = vpop.eup %1865 }
0x1160   :  { %1124 = vrot.lane.b32.xlu0 %v1866_v11, %s1999_s17  ;;  %v1868_v14 = vpop.eup %1867 }
0x1161   :  { %v1196_v15 = vadd.f32 1.0, %v1868_v14  ;;  %v1870_v16 = vpop.eup %1869 }
0x1162   :  { %v1118_v17 = vadd.f32 1.0, %v1870_v16 }
0x1163   :  { %1871 = vrcp.f32 %v1196_v15 }
0x1164   :  { %1873 = vrcp.f32 %v1118_v17 }
0x1170   :  { %v1872_v18 = vpop.eup %1871 }
0x1171   :  { %v1874_v21 = vpop.eup %1873  ;;  %v1203_v25 = vmul.f32 %v1872_v18, %v1201_v24 }
0x1172   :  { %v1122_v28 = vmul.f32 %v1874_v21, %v2298_v43 }
0x11cd   :  { %v1206_v19 = vpop.permute.xlu1 %1205 }
0x11ce   :  { %v1208_v20 = vmul.f32 %v1872_v18, %v1206_v19 }
0x11d0   :  { %1210 = vrot.lane.b32.xlu1 %v1208_v20, %s1999_s17 }
0x11d2   :  { %v1125_v22 = vpop.permute.xlu0 %1124 }
0x11d3   :  { %v1127_v23 = vmul.f32 %v1874_v21, %v1125_v22 }
0x11d5   :  { %1129 = vrot.lane.b32.xlu0 %v1127_v23, %s1999_s17 }
0x1242   :  { %v1211_v26 = vpop.permute.xlu1 %1210 }
0x1243   :  { %v2331_v27 = vadd.f32 %v1211_v26, %v1203_v25 }
0x1245   :  { %1875 = vtanh.f32 %v2331_v27  ;;  %v1360_v7 = vrot.slane %v2331_v27, 7 }
0x1247   :  { %v1130_v32 = vpop.permute.xlu0 %1129 }
0x1248   :  { %v2335_v34 = vadd.f32 %v1130_v32, %v1122_v28  ;;  %v1903_v32 = vld [vmem:[%s2389_s5] sm:$0x1] }
0x124a   :  { %1877 = vtanh.f32 %v2335_v34 }
0x1252   :  { %v1876_v35 = vpop.eup %1875 }
0x1253   :  { %1216 = vrot.lane.b32.xlu1 %v1876_v35, %s1999_s17 }
0x1257   :  { %v1878_v36 = vpop.eup %1877 }
0x1258   :  { %1135 = vrot.lane.b32.xlu0 %v1878_v36, %s1999_s17 }
0x12c5   :  { %v1217_v37 = vpop.permute.xlu1 %1216 }
0x12c6   :  { %v1219_v38 = vmul.f32 %v1872_v18, %v1217_v37 }
0x12c8   :  { %1221 = vrot.lane.b32.xlu0 %v1219_v38, %s1991_s24  ;;  %v1300_v39 = vpack.c.bf16 %v1219_v38, %v1219_v38 }
0x12ca   :  { %v1302_v40 = vrot.slane %v1300_v39, 3  ;;  %v1136_v42 = vpop.permute.xlu0 %1135 }
0x12cb   :  { %v1138_v44 = vmul.f32 %v1874_v21, %v1136_v42 }
0x12cc   :  { %1303 = vrot.lane.b32.xlu0 %v1302_v40, %s1991_s24 }
0x12cd   :  { %v1225_v43 = vrot.slane %v1138_v44, 2 }
0x12cf   :  { %1226 = vrot.lane.b32.xlu1 %v1225_v43, %s2000_s19 }
0x133a   :  { %v1222_v45 = vpop.permute.xlu0 %1221 }
0x133e   :  { %v1304_v46 = vpop.permute.xlu0 %1303 }
0x133f   :  { %1741 = vmatmul.mubr.msk.bf16.vlgmr.msra.gmra.mxu1 %vm102_vm1, %v1304_v46 }
0x1340   :  { %1745 = vmatpush3.bf16.msra.mxu1 %v2093_v29  ;;  %1752 = vmatprep.mubr.msk.bf16.mxu1 %vm1997_vm0, %v1996_v0 }
0x1341   :  { %1746 = vmatprep.subr.bf16.mxu1 %v1996_v0  ;;  %v1227_v47 = vpop.permute.xlu1 %1226 }
0x1342   :  { %v1229_v48 = vsel %vm102_vm1, %v1222_v45, %v1227_v47 }
0x1343   :  { %v1230_v49 = vpack.c.bf16 %v1229_v48, %v1229_v48 }
0x1344   :  { %1747 = vmatpush3.bf16.msra.mxu1 %v2096_v30 }
0x1345   :  { %1748 = vmatprep.subr.bf16.mxu1 %v1996_v0  ;;  %v1232_v50 = vrot.slane %v1230_v49, 3 }
0x1347   :  { %1733 = vmatmul.mubr.msk.bf16.vlgmr.msra.gmra.mxu0 %vm269_vm2, %v1232_v50 }
0x1348   :  { %1749 = vmatpush3.bf16.msra.mxu1 %v2100_v31 }
0x1349   :  { %1750 = vmatprep.subr.bf16.mxu1 %v1996_v0 }
0x134c   :  { %1751 = vmatpush3.bf16.msra.mxu1 %v2106_v33 }
0x13ff   :  { %v1342_v29 = vpop.f32.mrf.mxu1 }
0x1400   :  { %v1349_v52 = vrot.slane %v1342_v29, 1 }
0x1401   :  { %v1742_v51 = vpop.f32.mrf.mxu1 }
0x1402   :  { %v1351_v53 = vadd.f32 %v1349_v52, %v2085_v10 }
0x1403   :  { %v1345_v54 = vpop.f32.mrf.mxu1 }
0x1404   :  { %1879 = vtanh.f32 %v1351_v53  ;;  %v1517_v33 = vmul.f32 -1.442695, %v1351_v53 }
0x1405   :  { %v1743_v55 = vpop.f32.mrf.mxu1 }
0x1407   :  { %v1270_v30 = vpop.f32.mrf.mxu0 }
0x1408   :  { %v1271_v56 = vadd.f32 %v1270_v30, %v2134_v41 }
0x1409   :  { %v1734_v58 = vpop.f32.mrf.mxu0 }
0x140a   :  { %1881 = vtanh.f32 %v1271_v56  ;;  %v1515_v57 = vmul.f32 -1.442695, %v1271_v56 }
0x140b   :  { %v1273_v59 = vpop.f32.mrf.mxu0  ;;  %1883 = vpow2.f32 %v1517_v33 }
0x140c   :  { %1885 = vpow2.f32 %v1515_v57 }
0x140d   :  { %v1735_v60 = vpop.f32.mrf.mxu0 }
0x1411   :  { %v1880_v31 = vpop.eup %1879 }
0x1412   :  { %1364 = vrot.lane.b32.xlu0 %v1880_v31, %s1999_s17 }
0x1417   :  { %v1882_v0 = vpop.eup %1881 }
0x1418   :  { %1285 = vrot.lane.b32.xlu1 %v1882_v0, %s1999_s17  ;;  %v1884_v10 = vpop.eup %1883 }
0x1419   :  { %v1355_v61 = vadd.f32 1.0, %v1884_v10  ;;  %v1886_v62 = vpop.eup %1885 }
0x141a   :  { %v1279_v63 = vadd.f32 1.0, %v1886_v62 }
0x141b   :  { %1887 = vrcp.f32 %v1355_v61 }
0x141c   :  { %1889 = vrcp.f32 %v1279_v63 }
0x1428   :  { %v1888_v41 = vpop.eup %1887 }
0x1429   :  { %v1890_v3 = vpop.eup %1889  ;;  %v1362_v8 = vmul.f32 %v1888_v41, %v1360_v7 }
0x142a   :  { %v1283_v11 = vmul.f32 %v1890_v3, %v2335_v34 }
0x1484   :  { %v1365_v2 = vpop.permute.xlu0 %1364 }
0x1485   :  { %v1367_v1 = vmul.f32 %v1888_v41, %v1365_v2 }
0x1487   :  { %1369 = vrot.lane.b32.xlu0 %v1367_v1, %s1999_s17 }
0x148a   :  { %v1286_v5 = vpop.permute.xlu1 %1285 }
0x148b   :  { %v1288_v6 = vmul.f32 %v1890_v3, %v1286_v5 }
0x148d   :  { %1290 = vrot.lane.b32.xlu1 %v1288_v6, %s1999_s17 }
0x14f9   :  { %v1370_v9 = vpop.permute.xlu0 %1369 }
0x14fa   :  { %v1372_v4 = vadd.f32 %v1370_v9, %v1362_v8 }
0x14fc   :  { %1891 = vtanh.f32 %v1372_v4 }
0x14ff   :  { %v1291_v12 = vpop.permute.xlu1 %1290 }
0x1500   :  { %v1293_v13 = vadd.f32 %v1291_v12, %v1283_v11 }
0x1502   :  { %1893 = vtanh.f32 %v1293_v13 }
0x1509   :  { %v1892_v14 = vpop.eup %1891 }
0x150a   :  { %1375 = vrot.lane.b32.xlu0 %v1892_v14, %s1999_s17 }
0x150f   :  { %v1894_v15 = vpop.eup %1893 }
0x1510   :  { %1296 = vrot.lane.b32.xlu1 %v1894_v15, %s1999_s17 }
0x157c   :  { %v1376_v16 = vpop.permute.xlu0 %1375 }
0x157d   :  { %v1378_v17 = vmul.f32 %v1888_v41, %v1376_v16 }
0x157f   :  { %1380 = vrot.lane.b32.xlu1 %v1378_v17, %s1991_s24 }
0x1582   :  { %v1297_v18 = vpop.permute.xlu1 %1296 }
0x1583   :  { %v1299_v19 = vmul.f32 %v1890_v3, %v1297_v18 }
0x1585   :  { %v1384_v20 = vrot.slane %v1299_v19, 1 }
0x1587   :  { %1385 = vrot.lane.b32.xlu0 %v1384_v20, %s2000_s19 }
0x15f1   :  { %v1381_v21 = vpop.permute.xlu1 %1380 }
0x15f2   :  { %v1461_v22 = vsel %vm102_vm1, %v1381_v21, %v1372_v4 }
0x15f3   :  { %1463 = vst.msk [vmem:[%s2390_s6 - $0x7] sm:$0x80] %vm1462_vm3, %v1461_v22 }
0x15f9   :  { %v1386_v23 = vpop.permute.xlu0 %1385 }
0x15fa   :  { %v1388_v24 = vsel %vm102_vm1, %v1381_v21, %v1386_v23 }
0x15fb   :  { %v1389_v25 = vpack.c.bf16 %v1388_v24, %v1388_v24 }
0x15fd   :  { %v1391_v26 = vshrl.u32 %v1389_v25, 16 }
0x15ff   :  { %v1393_v27 = vrot.slane %v1391_v26, 3 }
0x1601   :  { %1753 = vmatmul.mubr.msk.bf16.vlgmr.msra.gmra.mxu1 %vm269_vm2, %v1393_v27 }
0x16c1   :  { %v1431_v28 = vpop.f32.mrf.mxu1 }
0x16c2   :  { %v1432_v34 = vadd.f32 %v1903_v32, %v1431_v28 }
0x16c3   :  { %v1754_v35 = vpop.f32.mrf.mxu1 }
0x16c4   :  { %1895 = vtanh.f32 %v1432_v34  ;;  %v1519_v39 = vmul.f32 -1.442695, %v1432_v34 }
0x16c5   :  { %v1434_v36 = vpop.f32.mrf.mxu1 }
0x16c6   :  { %1897 = vpow2.f32 %v1519_v39 }
0x16c7   :  { %v1755_v37 = vpop.f32.mrf.mxu1 }
0x16d1   :  { %v1896_v38 = vpop.eup %1895 }
0x16d2   :  { %1446 = vrot.lane.b32.xlu1 %v1896_v38, %s1999_s17 }
0x16d3   :  { %v1898_v40 = vpop.eup %1897 }
0x16d4   :  { %v1440_v42 = vadd.f32 1.0, %v1898_v40 }
0x16d6   :  { %1899 = vrcp.f32 %v1440_v42 }
0x16e3   :  { %v1900_v44 = vpop.eup %1899 }
0x16e4   :  { %v1444_v46 = vmul.f32 %v1900_v44, %v1293_v13 }
0x1744   :  { %v1447_v43 = vpop.permute.xlu1 %1446 }
0x1745   :  { %v1449_v45 = vmul.f32 %v1900_v44, %v1447_v43 }
0x1747   :  { %1451 = vrot.lane.b32.xlu0 %v1449_v45, %s1999_s17 }
0x17b9   :  { %v1452_v47 = vpop.permute.xlu0 %1451 }
0x17ba   :  { %v1454_v48 = vadd.f32 %v1452_v47, %v1444_v46 }
0x17bc   :  { %1901 = vtanh.f32 %v1454_v48 }
0x17c9   :  { %v1902_v49 = vpop.eup %1901 }
0x17ca   :  { %1457 = vrot.lane.b32.xlu1 %v1902_v49, %s1999_s17 }
0x183c   :  { %v1458_v50 = vpop.permute.xlu1 %1457 }
0x183d   :  { %v1460_v29 = vmul.f32 %v1900_v44, %v1458_v50 }
0x183f   :  { %1465 = vrot.lane.b32.xlu0 %v1460_v29, %s1991_s24 }
0x18b1   :  { %v1466_v52 = vpop.permute.xlu0 %1465 }
0x18b2   :  { %v1468_v51 = vsel %vm102_vm1, %v1466_v52, %v1454_v48 }
0x18b3   :  { %1520 = vst.msk [vmem:[%s2390_s6 + $0x1] sm:$0x1] %vm1470_vm4, %v1468_v51 }
0x18b4   :  { %1476 = vsyncpa [#allocation3], 1 }
0x18b5   :  { %1477 = vsyncpa [#allocation5], 1 }
0x18b6   :  { %1478 = vsyncpa [#allocation8], 1 }

</bundles_post_ra>
